<compile_context>
chip_gen: v6e
topology: v6e:2x2x1
jax: 0.10.0
libtpu: 0.0.40
codegen_flags: <defaults>
</compile_context>

<pallas_src>
import functools

import jax
import jax.numpy as jnp
from jax import lax
from jax.experimental import pallas as pl
from jax.experimental.pallas import tpu as pltpu

BN_EPS = 1e-5


# ---------------------------------------------------------------------------
# Fused kernel
# ---------------------------------------------------------------------------
def _fused_inverted_residual_kernel(
    x_ref, w1_ref, b1_ref, w2_ref, b2_ref, w3t_ref, b3_ref,   # inputs
    o_ref,                                                     # output
    xp_ref, dw_ref,                                            # VMEM scratch
    *, height, width, stride, expand_act, add_residual):
    """One batch element: expand 1x1 -> depthwise 3x3 -> project 1x1.

    x_ref : (1, cin, H*W)      flattened NCHW input (lane-dense load)
    w1_ref: (cin, hid)         1x1 expand weight (BN1 scale folded); eye if
                               expand_ratio == 1 (pure MXU transpose)
    w2_ref: (3, 3, hid)        depthwise weight (BN2 scale folded)
    w3t_ref: (oup, hid)        1x1 project weight, transposed (BN3 scale folded)
    o_ref : (1, oup, Ho*Wo)    flattened NCHW output (lane-dense store)
    xp_ref: (H+2, W+2, hid)    zero-padded hidden scratch (the 3x3 halo)
    dw_ref: (Ho, W, hid)       pre-subsample depthwise scratch (stride==2 only)
    """
    hid = w1_ref.shape[1]
    h_out = (height - 1) // stride + 1
    w_out = (width - 1) // stride + 1

    x2d = x_ref[0]                                           # (cin, H*W)

    # ---- 1x1 expand conv (BN folded into w1) + ReLU6 ---------------------
    # hidden[m, c] = sum_k x2d[k, m] * w1[k, c]  (contract dim 0 of both)
    hid2d = lax.dot_general(
        x2d, w1_ref[...], (((0,), (0,)), ((), ())),
        preferred_element_type=jnp.float32)                  # (H*W, hid)
    if expand_act:
        hid2d = jnp.clip(hid2d + b1_ref[...], 0.0, 6.0)

    # ---- place hidden into zero-padded VMEM scratch (halo of 1) ----------
    xp_ref[...] = jnp.zeros(xp_ref.shape, xp_ref.dtype)
    xp_ref[1:height + 1, 1:width + 1, :] = hid2d.reshape(height, width, hid)

    # ---- 3x3 depthwise conv (BN folded into w2) + ReLU6 ------------------
    wk = w2_ref[...]                                         # (3, 3, hid)
    acc = jnp.zeros((h_out, width, hid), jnp.float32)
    for dy in range(3):
        if stride == 1:
            row_idx = pl.ds(dy, h_out)
        else:
            row_idx = pl.ds(dy, h_out, stride=stride)        # stride on major dim
        for dx in range(3):
            win = xp_ref[row_idx, pl.ds(dx, width), :]       # (h_out, W, hid)
            acc = acc + win * wk[dy:dy + 1, dx:dx + 1, :]
    if stride == 1:
        y = acc
    else:
        dw_ref[...] = acc
        # single strided column subsample (one relayout instead of nine)
        y = dw_ref[:, pl.ds(0, w_out, stride=stride), :]
    y = jnp.clip(y + b2_ref[...], 0.0, 6.0)                  # (h_out, w_out, hid)

    # ---- 1x1 project conv (BN folded into w3) [+ residual] ---------------
    y2d = y.reshape(h_out * w_out, hid)
    out_t = lax.dot_general(
        w3t_ref[...], y2d, (((1,), (1,)), ((), ())),
        preferred_element_type=jnp.float32)                  # (oup, Ho*Wo)
    out_t = out_t + b3_ref[...]
    if add_residual:
        out_t = out_t + x2d                                  # identity: cin==oup, Ho*Wo==H*W
    o_ref[0] = out_t.astype(o_ref.dtype)


# ---------------------------------------------------------------------------
# Wrapper
# ---------------------------------------------------------------------------
def _fold_bn(bn_params):
    g, b, m, v = bn_params
    scale = g / jnp.sqrt(v + BN_EPS)
    bias = b - m * scale
    return scale, bias


def inverted_residual_forward(x_nchw, params, stride):
    """Matches InvertedResidual.forward (eval-mode BatchNorm). Input NCHW."""
    n, inp, height, width = x_nchw.shape
    oup = params["w3"].shape[1]
    hid = params["hidden"]
    expand_ratio = params["expand_ratio"]
    identity = (stride == 1) and (inp == oup)
    h_out = (height - 1) // stride + 1
    w_out = (width - 1) // stride + 1
    m_in = height * width
    m_out = h_out * w_out

    # Flattened NCHW I/O: free reshape, lane-dense loads/stores, no transposes.
    x3 = x_nchw.reshape(n, inp, m_in).astype(jnp.float32)

    # Fold BN scales into the conv weights at trace time (tiny tensors).
    if expand_ratio != 1:
        s1, b1 = _fold_bn(params["bn1"])
        w1f = params["w1"] * s1[None, :]
        b1f = b1.reshape(1, hid)
        expand_act = True
    else:
        # No expand conv: the 1x1 matmul acts purely as an MXU transpose.
        w1f = jnp.eye(inp, dtype=jnp.float32)
        b1f = jnp.zeros((1, hid), jnp.float32)
        expand_act = False
    s2, b2 = _fold_bn(params["bn2"])
    w2f = params["w2"] * s2[None, None, :]
    b2f = b2.reshape(1, 1, hid)
    s3, b3 = _fold_bn(params["bn3"])
    w3t = (params["w3"] * s3[None, :]).T                     # (oup, hid)
    b3f = b3.reshape(oup, 1)

    kernel = functools.partial(
        _fused_inverted_residual_kernel,
        height=height, width=width, stride=stride,
        expand_act=expand_act, add_residual=identity)

    out3 = pl.pallas_call(
        kernel,
        out_shape=jax.ShapeDtypeStruct((n, oup, m_out), jnp.float32),
        grid=(n,),
        in_specs=[
            pl.BlockSpec((1, inp, m_in), lambda b: (b, 0, 0)),
            pl.BlockSpec((inp, hid), lambda b: (0, 0)),
            pl.BlockSpec((1, hid), lambda b: (0, 0)),
            pl.BlockSpec((3, 3, hid), lambda b: (0, 0, 0)),
            pl.BlockSpec((1, 1, hid), lambda b: (0, 0, 0)),
            pl.BlockSpec((oup, hid), lambda b: (0, 0)),
            pl.BlockSpec((oup, 1), lambda b: (0, 0)),
        ],
        out_specs=pl.BlockSpec((1, oup, m_out), lambda b: (b, 0, 0)),
        scratch_shapes=[
            pltpu.VMEM((height + 2, width + 2, hid), jnp.float32),
            pltpu.VMEM((h_out, width, hid), jnp.float32),
        ],
        compiler_params=pltpu.CompilerParams(
            dimension_semantics=("parallel",),
            vmem_limit_bytes=48 * 1024 * 1024),
    )(x3, w1f, b1f, w2f, b2f, w3t, b3f)

    return out3.reshape(n, oup, h_out, w_out)


# ---------------------------------------------------------------------------
# Parameters
# ---------------------------------------------------------------------------
def init_params(key, inp, oup, expand_ratio):
    hidden = int(round(inp * expand_ratio))
    ks = jax.random.split(key, 16)

    def bn(k, c):
        k1, k2, k3, k4 = jax.random.split(k, 4)
        g = 1.0 + 0.1 * jax.random.normal(k1, (c,), jnp.float32)
        b = 0.1 * jax.random.normal(k2, (c,), jnp.float32)
        m = 0.1 * jax.random.normal(k3, (c,), jnp.float32)
        v = 0.5 + 0.5 * jnp.abs(jax.random.normal(k4, (c,), jnp.float32))
        return g, b, m, v

    p = {"hidden": hidden, "expand_ratio": expand_ratio}
    if expand_ratio != 1:
        p["w1"] = 0.1 * jax.random.normal(ks[0], (inp, hidden), jnp.float32)
        p["bn1"] = bn(ks[1], hidden)
    p["w2"] = 0.1 * jax.random.normal(ks[2], (3, 3, hidden), jnp.float32)
    p["bn2"] = bn(ks[3], hidden)
    p["w3"] = 0.1 * jax.random.normal(ks[4], (hidden, oup), jnp.float32)
    p["bn3"] = bn(ks[5], oup)
    return p


# ---------------------------------------------------------------------------
# Pure-JAX reference (for verification)
# ---------------------------------------------------------------------------
def reference_forward(x_nchw, params, stride):
    n, inp, h, w = x_nchw.shape
    oup = params["w3"].shape[1]
    identity = (stride == 1) and (inp == oup)
    x = jnp.transpose(x_nchw, (0, 2, 3, 1)).astype(jnp.float32)

    def bn(y, prm):
        g, b, m, v = prm
        return (y - m) / jnp.sqrt(v + BN_EPS) * g + b

    if params["expand_ratio"] != 1:
        y = jnp.einsum("nhwc,cd->nhwd", x, params["w1"])
        y = jnp.clip(bn(y, params["bn1"]), 0.0, 6.0)
    else:
        y = x
    hid = params["hidden"]
    y = lax.conv_general_dilated(
        y, params["w2"][:, :, None, :], window_strides=(stride, stride),
        padding=((1, 1), (1, 1)), dimension_numbers=("NHWC", "HWIO", "NHWC"),
        feature_group_count=hid)
    y = jnp.clip(bn(y, params["bn2"]), 0.0, 6.0)
    y = jnp.einsum("nhwc,cd->nhwd", y, params["w3"])
    y = bn(y, params["bn3"])
    if identity:
        y = y + x
    return jnp.transpose(y, (0, 3, 1, 2))


# ---------------------------------------------------------------------------
if __name__ == "__main__":
    key = jax.random.PRNGKey(0)

    configs = [
        # (N, inp, oup, H, W, stride, expand_ratio)
        (2, 4, 4, 16, 16, 1, 2),   # identity residual, expand path
        (2, 4, 8, 16, 16, 2, 3),   # stride-2, non-identity path
        (2, 8, 8, 16, 16, 1, 1),   # expand_ratio == 1 path, identity residual
    ]
    for cfg in configs:
        n, inp, oup, h, w, stride, er = cfg
        kx, kp, key = jax.random.split(key, 3)
        x = jax.random.normal(kx, (n, inp, h, w), jnp.float32)
        params = init_params(kp, inp, oup, er)

        out = jax.block_until_ready(inverted_residual_forward(x, params, stride))
        ref = jax.block_until_ready(reference_forward(x, params, stride))

        assert out.shape == ref.shape, (cfg, out.shape, ref.shape)
        max_err = float(jnp.max(jnp.abs(out - ref)))
        assert jnp.allclose(out, ref, rtol=2e-4, atol=2e-4), (cfg, max_err)

    print("KERNEL_OK")
</pallas_src>

<mosaic_0001>
module attributes {stable_mosaic.version = 11 : i64} {
  func.func @_fused_inverted_residual_kernel(%arg0: i32, %arg1: memref<1x4x256xf32, #tpu.memory_space<vmem>>, %arg2: memref<4x8xf32, #tpu.memory_space<vmem>>, %arg3: memref<1x8xf32, #tpu.memory_space<vmem>>, %arg4: memref<3x3x8xf32, #tpu.memory_space<vmem>>, %arg5: memref<1x1x8xf32, #tpu.memory_space<vmem>>, %arg6: memref<4x8xf32, #tpu.memory_space<vmem>>, %arg7: memref<4x1xf32, #tpu.memory_space<vmem>>, %arg8: memref<1x4x256xf32, #tpu.memory_space<vmem>>, %arg9: memref<18x18x8xf32, #tpu.memory_space<vmem>>, %arg10: memref<16x16x8xf32, #tpu.memory_space<vmem>>) attributes {dimension_semantics = [#tpu.dimension_semantics<parallel>], iteration_bounds = array<i64: 2>, scalar_prefetch = 0 : i64, scratch_operands = 2 : i64, tpu.core_type = #tpu.core_type<tc>, window_params = [{transform_indices = @transform_0, window_bounds = array<i64: 1, 4, 256>}, {pipeline_mode = #tpu.pipeline_mode<synchronous>, transform_indices = @transform_1, window_bounds = array<i64: 4, 8>}, {pipeline_mode = #tpu.pipeline_mode<synchronous>, transform_indices = @transform_2, window_bounds = array<i64: 1, 8>}, {pipeline_mode = #tpu.pipeline_mode<synchronous>, transform_indices = @transform_3, window_bounds = array<i64: 3, 3, 8>}, {pipeline_mode = #tpu.pipeline_mode<synchronous>, transform_indices = @transform_4, window_bounds = array<i64: 1, 1, 8>}, {pipeline_mode = #tpu.pipeline_mode<synchronous>, transform_indices = @transform_5, window_bounds = array<i64: 4, 8>}, {pipeline_mode = #tpu.pipeline_mode<synchronous>, transform_indices = @transform_6, window_bounds = array<i64: 4, 1>}, {transform_indices = @transform_7, window_bounds = array<i64: 1, 4, 256>}]} {
    %c0 = arith.constant 0 : index
    %c0_0 = arith.constant 0 : index
    %c0_1 = arith.constant 0 : index
    %0 = vector.load %arg1[%c0, %c0_0, %c0_1] : memref<1x4x256xf32, #tpu.memory_space<vmem>>, vector<1x4x256xf32>
    %1 = vector.shape_cast %0 : vector<1x4x256xf32> to vector<4x256xf32>
    %c0_2 = arith.constant 0 : index
    %c0_3 = arith.constant 0 : index
    %2 = vector.load %arg2[%c0_2, %c0_3] : memref<4x8xf32, #tpu.memory_space<vmem>>, vector<4x8xf32>
    %cst = arith.constant dense<0.000000e+00> : vector<256x8xf32>
    %3 = tpu.matmul %1, %2, %cst {dimension_numbers = #tpu.dot_dimension_numbers<[0], [0], [1], [1], [0, 1, 1, 1], [], []>} : vector<4x256xf32>, vector<4x8xf32>, vector<256x8xf32> -> vector<256x8xf32>
    %c0_4 = arith.constant 0 : index
    %c0_5 = arith.constant 0 : index
    %4 = vector.load %arg3[%c0_4, %c0_5] : memref<1x8xf32, #tpu.memory_space<vmem>>, vector<1x8xf32>
    %5 = vector.broadcast %4 : vector<1x8xf32> to vector<256x8xf32>
    %6 = arith.addf %3, %5 : vector<256x8xf32>
    %cst_6 = arith.constant 0.000000e+00 : f32
    %cst_7 = arith.constant 6.000000e+00 : f32
    %7 = vector.broadcast %cst_6 : f32 to vector<256x8xf32>
    %8 = arith.maximumf %7, %6 : vector<256x8xf32>
    %9 = vector.broadcast %cst_7 : f32 to vector<256x8xf32>
    %10 = arith.minimumf %9, %8 : vector<256x8xf32>
    %cst_8 = arith.constant 0.000000e+00 : f32
    %11 = vector.broadcast %cst_8 : f32 to vector<18x18x8xf32>
    %c0_9 = arith.constant 0 : index
    %c0_10 = arith.constant 0 : index
    %c0_11 = arith.constant 0 : index
    %12 = vector.load %arg9[%c0_9, %c0_10, %c0_11] : memref<18x18x8xf32, #tpu.memory_space<vmem>>, vector<18x18x8xf32>
    tpu.vector_store %arg9[%c0_9, %c0_10, %c0_11], %11 {strides = array<i32>} : memref<18x18x8xf32, #tpu.memory_space<vmem>>, vector<18x18x8xf32>,
    %13 = vector.shape_cast %10 : vector<256x8xf32> to vector<16x16x8xf32>
    %c1 = arith.constant 1 : index
    %c1_12 = arith.constant 1 : index
    %c0_13 = arith.constant 0 : index
    %14 = vector.load %arg9[%c1, %c1_12, %c0_13] : memref<18x18x8xf32, #tpu.memory_space<vmem>>, vector<16x16x8xf32>
    tpu.vector_store %arg9[%c1, %c1_12, %c0_13], %13 {strides = array<i32>} : memref<18x18x8xf32, #tpu.memory_space<vmem>>, vector<16x16x8xf32>,
    %c0_14 = arith.constant 0 : index
    %c0_15 = arith.constant 0 : index
    %c0_16 = arith.constant 0 : index
    %15 = vector.load %arg4[%c0_14, %c0_15, %c0_16] : memref<3x3x8xf32, #tpu.memory_space<vmem>>, vector<3x3x8xf32>
    %cst_17 = arith.constant 0.000000e+00 : f32
    %16 = vector.broadcast %cst_17 : f32 to vector<16x16x8xf32>
    %c0_18 = arith.constant 0 : index
    %c0_19 = arith.constant 0 : index
    %c0_20 = arith.constant 0 : index
    %17 = vector.load %arg9[%c0_18, %c0_19, %c0_20] : memref<18x18x8xf32, #tpu.memory_space<vmem>>, vector<16x16x8xf32>
    %18 = vector.extract_strided_slice %15 {offsets = [0, 0, 0], sizes = [1, 1, 8], strides = [1, 1, 1]} : vector<3x3x8xf32> to vector<1x1x8xf32>
    %19 = vector.broadcast %18 : vector<1x1x8xf32> to vector<16x16x8xf32>
    %20 = arith.mulf %17, %19 : vector<16x16x8xf32>
    %21 = arith.addf %16, %20 : vector<16x16x8xf32>
    %c0_21 = arith.constant 0 : index
    %c1_22 = arith.constant 1 : index
    %c0_23 = arith.constant 0 : index
    %22 = vector.load %arg9[%c0_21, %c1_22, %c0_23] : memref<18x18x8xf32, #tpu.memory_space<vmem>>, vector<16x16x8xf32>
    %23 = vector.extract_strided_slice %15 {offsets = [0, 1, 0], sizes = [1, 1, 8], strides = [1, 1, 1]} : vector<3x3x8xf32> to vector<1x1x8xf32>
    %24 = vector.broadcast %23 : vector<1x1x8xf32> to vector<16x16x8xf32>
    %25 = arith.mulf %22, %24 : vector<16x16x8xf32>
    %26 = arith.addf %21, %25 : vector<16x16x8xf32>
    %c0_24 = arith.constant 0 : index
    %c2 = arith.constant 2 : index
    %c0_25 = arith.constant 0 : index
    %27 = vector.load %arg9[%c0_24, %c2, %c0_25] : memref<18x18x8xf32, #tpu.memory_space<vmem>>, vector<16x16x8xf32>
    %28 = vector.extract_strided_slice %15 {offsets = [0, 2, 0], sizes = [1, 1, 8], strides = [1, 1, 1]} : vector<3x3x8xf32> to vector<1x1x8xf32>
    %29 = vector.broadcast %28 : vector<1x1x8xf32> to vector<16x16x8xf32>
    %30 = arith.mulf %27, %29 : vector<16x16x8xf32>
    %31 = arith.addf %26, %30 : vector<16x16x8xf32>
    %c1_26 = arith.constant 1 : index
    %c0_27 = arith.constant 0 : index
    %c0_28 = arith.constant 0 : index
    %32 = vector.load %arg9[%c1_26, %c0_27, %c0_28] : memref<18x18x8xf32, #tpu.memory_space<vmem>>, vector<16x16x8xf32>
    %33 = vector.extract_strided_slice %15 {offsets = [1, 0, 0], sizes = [1, 1, 8], strides = [1, 1, 1]} : vector<3x3x8xf32> to vector<1x1x8xf32>
    %34 = vector.broadcast %33 : vector<1x1x8xf32> to vector<16x16x8xf32>
    %35 = arith.mulf %32, %34 : vector<16x16x8xf32>
    %36 = arith.addf %31, %35 : vector<16x16x8xf32>
    %c1_29 = arith.constant 1 : index
    %c1_30 = arith.constant 1 : index
    %c0_31 = arith.constant 0 : index
    %37 = vector.load %arg9[%c1_29, %c1_30, %c0_31] : memref<18x18x8xf32, #tpu.memory_space<vmem>>, vector<16x16x8xf32>
    %38 = vector.extract_strided_slice %15 {offsets = [1, 1, 0], sizes = [1, 1, 8], strides = [1, 1, 1]} : vector<3x3x8xf32> to vector<1x1x8xf32>
    %39 = vector.broadcast %38 : vector<1x1x8xf32> to vector<16x16x8xf32>
    %40 = arith.mulf %37, %39 : vector<16x16x8xf32>
    %41 = arith.addf %36, %40 : vector<16x16x8xf32>
    %c1_32 = arith.constant 1 : index
    %c2_33 = arith.constant 2 : index
    %c0_34 = arith.constant 0 : index
    %42 = vector.load %arg9[%c1_32, %c2_33, %c0_34] : memref<18x18x8xf32, #tpu.memory_space<vmem>>, vector<16x16x8xf32>
    %43 = vector.extract_strided_slice %15 {offsets = [1, 2, 0], sizes = [1, 1, 8], strides = [1, 1, 1]} : vector<3x3x8xf32> to vector<1x1x8xf32>
    %44 = vector.broadcast %43 : vector<1x1x8xf32> to vector<16x16x8xf32>
    %45 = arith.mulf %42, %44 : vector<16x16x8xf32>
    %46 = arith.addf %41, %45 : vector<16x16x8xf32>
    %c2_35 = arith.constant 2 : index
    %c0_36 = arith.constant 0 : index
    %c0_37 = arith.constant 0 : index
    %47 = vector.load %arg9[%c2_35, %c0_36, %c0_37] : memref<18x18x8xf32, #tpu.memory_space<vmem>>, vector<16x16x8xf32>
    %48 = vector.extract_strided_slice %15 {offsets = [2, 0, 0], sizes = [1, 1, 8], strides = [1, 1, 1]} : vector<3x3x8xf32> to vector<1x1x8xf32>
    %49 = vector.broadcast %48 : vector<1x1x8xf32> to vector<16x16x8xf32>
    %50 = arith.mulf %47, %49 : vector<16x16x8xf32>
    %51 = arith.addf %46, %50 : vector<16x16x8xf32>
    %c2_38 = arith.constant 2 : index
    %c1_39 = arith.constant 1 : index
    %c0_40 = arith.constant 0 : index
    %52 = vector.load %arg9[%c2_38, %c1_39, %c0_40] : memref<18x18x8xf32, #tpu.memory_space<vmem>>, vector<16x16x8xf32>
    %53 = vector.extract_strided_slice %15 {offsets = [2, 1, 0], sizes = [1, 1, 8], strides = [1, 1, 1]} : vector<3x3x8xf32> to vector<1x1x8xf32>
    %54 = vector.broadcast %53 : vector<1x1x8xf32> to vector<16x16x8xf32>
    %55 = arith.mulf %52, %54 : vector<16x16x8xf32>
    %56 = arith.addf %51, %55 : vector<16x16x8xf32>
    %c2_41 = arith.constant 2 : index
    %c2_42 = arith.constant 2 : index
    %c0_43 = arith.constant 0 : index
    %57 = vector.load %arg9[%c2_41, %c2_42, %c0_43] : memref<18x18x8xf32, #tpu.memory_space<vmem>>, vector<16x16x8xf32>
    %58 = vector.extract_strided_slice %15 {offsets = [2, 2, 0], sizes = [1, 1, 8], strides = [1, 1, 1]} : vector<3x3x8xf32> to vector<1x1x8xf32>
    %59 = vector.broadcast %58 : vector<1x1x8xf32> to vector<16x16x8xf32>
    %60 = arith.mulf %57, %59 : vector<16x16x8xf32>
    %61 = arith.addf %56, %60 : vector<16x16x8xf32>
    %c0_44 = arith.constant 0 : index
    %c0_45 = arith.constant 0 : index
    %c0_46 = arith.constant 0 : index
    %62 = vector.load %arg5[%c0_44, %c0_45, %c0_46] : memref<1x1x8xf32, #tpu.memory_space<vmem>>, vector<1x1x8xf32>
    %63 = vector.broadcast %62 : vector<1x1x8xf32> to vector<16x16x8xf32>
    %64 = arith.addf %61, %63 : vector<16x16x8xf32>
    %cst_47 = arith.constant 0.000000e+00 : f32
    %cst_48 = arith.constant 6.000000e+00 : f32
    %65 = vector.broadcast %cst_47 : f32 to vector<16x16x8xf32>
    %66 = arith.maximumf %65, %64 : vector<16x16x8xf32>
    %67 = vector.broadcast %cst_48 : f32 to vector<16x16x8xf32>
    %68 = arith.minimumf %67, %66 : vector<16x16x8xf32>
    %69 = vector.shape_cast %68 : vector<16x16x8xf32> to vector<256x8xf32>
    %c0_49 = arith.constant 0 : index
    %c0_50 = arith.constant 0 : index
    %70 = vector.load %arg6[%c0_49, %c0_50] : memref<4x8xf32, #tpu.memory_space<vmem>>, vector<4x8xf32>
    %cst_51 = arith.constant dense<0.000000e+00> : vector<4x256xf32>
    %71 = tpu.matmul %70, %69, %cst_51 {dimension_numbers = #tpu.dot_dimension_numbers<[1], [1], [0], [0], [0, 0, 1, 0], [], []>} : vector<4x8xf32>, vector<256x8xf32>, vector<4x256xf32> -> vector<4x256xf32>
    %c0_52 = arith.constant 0 : index
    %c0_53 = arith.constant 0 : index
    %72 = vector.load %arg7[%c0_52, %c0_53] : memref<4x1xf32, #tpu.memory_space<vmem>>, vector<4x1xf32>
    %73 = vector.broadcast %72 : vector<4x1xf32> to vector<4x256xf32>
    %74 = arith.addf %71, %73 : vector<4x256xf32>
    %75 = arith.addf %74, %1 : vector<4x256xf32>
    %c0_54 = arith.constant 0 : index
    %c0_55 = arith.constant 0 : index
    %c0_56 = arith.constant 0 : index
    %76 = vector.load %arg8[%c0_54, %c0_55, %c0_56] : memref<1x4x256xf32, #tpu.memory_space<vmem>>, vector<1x4x256xf32>
    %77 = vector.shape_cast %76 : vector<1x4x256xf32> to vector<4x256xf32>
    %78 = vector.shape_cast %75 : vector<4x256xf32> to vector<1x4x256xf32>
    tpu.vector_store %arg8[%c0_54, %c0_55, %c0_56], %78 {strides = array<i32>} : memref<1x4x256xf32, #tpu.memory_space<vmem>>, vector<1x4x256xf32>,
    return
  }
  func.func @transform_0(%arg0: i32) -> (i32, i32, i32) {
    %c0_i32 = arith.constant 0 : i32
    %c0_i32_0 = arith.constant 0 : i32
    %c0_i32_1 = arith.constant 0 : i32
    return %arg0, %c0_i32, %c0_i32_0 : i32, i32, i32
  }
  func.func @transform_1(%arg0: i32) -> (i32, i32) {
    %c0_i32 = arith.constant 0 : i32
    %c0_i32_0 = arith.constant 0 : i32
    %c0_i32_1 = arith.constant 0 : i32
    return %c0_i32, %c0_i32_0 : i32, i32
  }
  func.func @transform_2(%arg0: i32) -> (i32, i32) {
    %c0_i32 = arith.constant 0 : i32
    %c0_i32_0 = arith.constant 0 : i32
    %c0_i32_1 = arith.constant 0 : i32
    return %c0_i32, %c0_i32_0 : i32, i32
  }
  func.func @transform_3(%arg0: i32) -> (i32, i32, i32) {
    %c0_i32 = arith.constant 0 : i32
    %c0_i32_0 = arith.constant 0 : i32
    %c0_i32_1 = arith.constant 0 : i32
    %c0_i32_2 = arith.constant 0 : i32
    return %c0_i32, %c0_i32_0, %c0_i32_1 : i32, i32, i32
  }
  func.func @transform_4(%arg0: i32) -> (i32, i32, i32) {
    %c0_i32 = arith.constant 0 : i32
    %c0_i32_0 = arith.constant 0 : i32
    %c0_i32_1 = arith.constant 0 : i32
    %c0_i32_2 = arith.constant 0 : i32
    return %c0_i32, %c0_i32_0, %c0_i32_1 : i32, i32, i32
  }
  func.func @transform_5(%arg0: i32) -> (i32, i32) {
    %c0_i32 = arith.constant 0 : i32
    %c0_i32_0 = arith.constant 0 : i32
    %c0_i32_1 = arith.constant 0 : i32
    return %c0_i32, %c0_i32_0 : i32, i32
  }
  func.func @transform_6(%arg0: i32) -> (i32, i32) {
    %c0_i32 = arith.constant 0 : i32
    %c0_i32_0 = arith.constant 0 : i32
    %c0_i32_1 = arith.constant 0 : i32
    return %c0_i32, %c0_i32_0 : i32, i32
  }
  func.func @transform_7(%arg0: i32) -> (i32, i32, i32) {
    %c0_i32 = arith.constant 0 : i32
    %c0_i32_0 = arith.constant 0 : i32
    %c0_i32_1 = arith.constant 0 : i32
    return %arg0, %c0_i32, %c0_i32_0 : i32, i32, i32
  }
}

</mosaic_0001>

<bundles_post_ra>
// kernel: tpu_custom_call.1
= control target key start
LH: loop header
LB: loop body
LE: loop exit
PB: predicated region body
PF: predicated region fallthrough
CT: control target
= control target key end

     0   :  { %s3840_s0 = inlined_call_operand.hbm [shape: f32[2,4,256], index: 0, kind: input, shape index: {}]   ;;  %s3841_s1 = inlined_call_operand.vmem [shape: f32[4,8], index: 1, kind: input, shape index: {}]   ;;  %s3842_s2 = inlined_call_operand.hbm [shape: f32[1,8], index: 2, kind: input, shape index: {}]   ;;  %s3843_s3 = inlined_call_operand.hbm [shape: f32[3,3,8], index: 3, kind: input, shape index: {}]   ;;  %s3844_s4 = inlined_call_operand.vmem [shape: f32[1,1,8], index: 4, kind: input, shape index: {}]   ;;  %s3845_s5 = inlined_call_operand.vmem [shape: f32[4,8], index: 5, kind: input, shape index: {}]   ;;  %s3846_s6 = inlined_call_operand.vmem [shape: f32[4,1], index: 6, kind: input, shape index: {}]   ;;  %s3847_s7 = inlined_call_operand.hbm [shape: f32[2,4,256], index: 7, kind: output, shape index: {}]  }
   0x1   :  { %3889 = sst [smem:[#allocation60_spill]] %s3842_s2 }
   0x2   :  { %3890 = sst [smem:[#allocation61_spill]] %s3843_s3 }
   0x3   :  { %12 = vsyncpa [#allocation5], 0 }
   0x4   :  { %14 = vsyncpa [#allocation5 + $0x1], 0 }
   0x5   :  { %15 = vsyncpa [#allocation8], 0 }
   0x6   :  { %16 = vsyncpa [#allocation6], 0 }
   0x7   :  { %18 = vsyncpa [#allocation6 + $0x1], 0  ;;  %s2671_s24 = smov 0   ;;  %s2673_s25 = smov 0  }
   0x8   :  { %s2675_s26 = smov 0   ;;  %s2677_s27 = smov 0  }
   0x9 LB: > { %s2692_s28 = sadd.s32 4294967295, %s2621_s27   ;;  %s2172_s29 = sadd.s32 4294967294, %s2621_s27   ;;  %s2621_s27 = sphi %s2677_s27, %s4016_s27   ;;  %s2617_s26 = sphi %s2675_s26, %s4015_s26   ;;  %s2613_s25 = sphi %s2673_s25, %s4014_s25   ;;  %s2609_s24 = sphi %s2671_s24, %s4013_s24  }
   0xa   : > { %p44_p0 = scmp.ne.s32.totalorder %s2613_s25, %s2609_s24  ;;  %p3848_p1 = scmp.eq.s32.totalorder %s2692_s28, 0 }
   0xb   : > { %p200_p3 = scmp.eq.s32.totalorder %s2172_s29, 1  ;;  %p2173_p5 = scmp.ge.s32.totalorder %s2621_s27, 1 }
   0xc   : > { %p2701_p4 = por %p3848_p1, %p44_p0  ;;  %p207_p7 = scmp.lt.s32.totalorder %s2621_s27, 3 }
   0xd   : > { %p2706_p6 = por %p200_p3, %p44_p0  ;;  %s2623_s10 = smov [#allocation7]  }
   0xe   : > { %s3891_s30 = scalar_select %p2701_p4, 1, 0 }
   0xf   : > { %s3892_s8 = scalar_select %p2706_p6, 1, 0 }
  0x10   : > { %p2711_p8 = pnand %p2173_p5, %p207_p7  ;;  %s223_s11 = sshll.u32 %s2623_s10, 4  ;;  %s224_s11 = int_to_ptr.vmem [resolvable:$true] %s223_s11 }
  0x11   : > { %s2624_s12 = smov [#allocation9]   ;;  %s2484_s15 = scalar_lea.vmem %s224_s11, 16 }
  0x12   : > { %s3893_s9 = scalar_select %p2711_p8, 1, 0 }
  0x13   : > { %p2389_p10 = pneg %p2711_p8  ;;  %s233_s13 = sshll.u32 %s2624_s12, 4  ;;  %s234_s13 = int_to_ptr.vmem [resolvable:$true] %s233_s13 }
  0x14   : > { %p2485_p13 = scmp.ne.s32.totalorder %s224_s11, %s2484_s15  ;;  %s2491_s16 = scalar_lea.vmem %s224_s11, 32 }
  0x15   : > { %p2720_p11 = pnand %p2389_p10, %p3848_p1  ;;  %p2492_p5 = scmp.lt.s32.totalorder %s224_s11, %s224_s11 }
  0x16   : > { %p2493_p7 = scmp.lt.s32.totalorder %s2491_s16, %s2484_s15 }
  0x17   : > { %p2475_p12 = pneg %p2720_p11 }
  0x18   : > { %p2494_p9 = por %p2493_p7, %p2492_p5 }
  0x19   : > { %p2487_p0 = pnand %p2485_p13, %p2475_p12 }
  0x1b   : > { %p2488_p3 = pneg %p2487_p0 }
  0x1d   : > { %p2495_p2 = pnand %p2494_p9, %p2488_p3 }
  0x1f   : > { %2498 = shalt.err (!%p2495_p2)
}
  0x20   : > { %s3895_s2 = sld [smem:[#allocation60_spill]]  ;;  %s2510_s19 = scalar_lea.vmem %s234_s13, 192 }
  0x21   : > { %p2511_p10 = scmp.ne.s32.totalorder %s234_s13, %s2510_s19  ;;  %p2518_p0 = scmp.lt.s32.totalorder %s234_s13, %s234_s13 }
  0x22   : > { %p2519_p6 = scmp.lt.s32.totalorder %s2510_s19, %s2510_s19 }
  0x23   : > { %p2513_p1 = pnand %p2511_p10, %p2475_p12 }
  0x24   : > { %p2520_p4 = por %p2519_p6, %p2518_p0 }
  0x25   : > { %p2514_p13 = pneg %p2513_p1 }
  0x26   : > { %2392 = dma.hbm_to_vmem [thread:$0]  (!%p2720_p11), %s3895_s2, 16, %s224_s11, [#allocation8]  }
  0x27   : > { %p2521_p8 = pnand %p2520_p4, %p2514_p13 }
  0x29   : > { %2524 = shalt.err (!%p2521_p8)
}
  0x2a   : > { %s2625_s20 = smov 64   ;;  %s2626_s21 = smov 4  }
  0x2b   : > { %s3896_s3 = sld [smem:[#allocation61_spill]]  ;;  %s2743_s29 = sadd.s32 1, %s2621_s27  }
  0x2c   : > { %s31_s10 = sadd.s32 1, %s2617_s26  ;;  %s28_s11 = ssub.s32 %s2621_s27, %s2743_s29 }
  0x2d   : > { %p38_p1 = scmp.ne.s32.totalorder %s2617_s26, %s2613_s25  ;;  %p29_p2 = scmp.eq.s32.totalorder %s28_s11, 0 }
  0x2e   : > { %p39_p4 = scmp.eq.s32.totalorder %s2621_s27, 0  ;;  %p3897_p6 = scmp.eq.s32.totalorder %s2692_s28, 1 }
  0x2f   : > { %p2406_p9 = scmp.lt.s32.totalorder %s2621_s27, 2  ;;  %s256_s14 = sand.u32 1, %s2617_s26  }
  0x30   : > { %p2753_p8 = por %p3897_p6, %p38_p1  ;;  %p40_p12 = por %p39_p4, %p38_p1 }
  0x31   : > { %2395 = dma.hbm_to_vmem [thread:$0]  (!%p2720_p11), %s3896_s3, 192, %s234_s13, [#allocation8], %s2625_s20, %s2625_s20, %s2626_s21  }
  0x32   : > { %s3898_s12 = scalar_select %p2753_p8, 1, 0 }
  0x33   : > { %s2759_s15 = scalar_select %p29_p2, %s2617_s26, %s31_s10  }
  0x34   : > { %s2177_s16 = sshll.u32 %s256_s14, 3  ;;  %s2258_s13 = sshll.u32 %s2621_s27, 7 }
  0x35   : > { %s2766_s19 = scalar_lea.hbm %s3840_s0, %s2258_s13  ;;  %s260_s20 = scalar_lea.vmem [#allocation4], %s2177_s16 }
  0x36   : > { %s268_s21 = sshll.u32 %s260_s20, 4  ;;  %p2768_p11 = pnand %p2406_p9, %p40_p12  ;;  %s269_s21 = int_to_ptr.vmem [resolvable:$true] %s268_s21 }
  0x37   : > { %s257_s23 = scalar_lea.sflag [#allocation5], %s256_s14  ;;  %s2525_s10 = scalar_lea.hbm %s2766_s19, 128 }
  0x38   : > { %p2526_p3 = scmp.ne.s32.totalorder %s2766_s19, %s2525_s10  ;;  %p2527_p5 = pneg %p2768_p11 }
  0x39   : > { %s2530_s17 = scalar_lea.hbm %s3840_s0, 256  ;;  %p2531_p13 = scmp.lt.s32.totalorder %s2766_s19, %s3840_s0 }
  0x3a   : > { %p2528_p7 = pnand %p2527_p5, %p2526_p3  ;;  %p2532_p0 = scmp.lt.s32.totalorder %s2530_s17, %s2525_s10 }
  0x3c   : > { %p2529_p10 = pneg %p2528_p7  ;;  %p2533_p1 = por %p2532_p0, %p2531_p13 }
  0x3e   : > { %p2534_p2 = pnand %p2533_p1, %p2529_p10 }
  0x40   : > { %2537 = shalt.err (!%p2534_p2)
}
  0x41   : > { %s2538_s20 = scalar_lea.vmem %s269_s21, 128  ;;  %s2627_s14 = smov [#allocation4]  }
  0x42   : > { %p2539_p4 = scmp.ne.s32.totalorder %s269_s21, %s2538_s20  ;;  %s2543_s2 = sshll.u32 %s2627_s14, 4  ;;  %s2544_s2 = int_to_ptr.vmem [resolvable:$false] %s2543_s2 }
  0x43   : > { %s2545_s3 = scalar_lea.vmem %s2544_s2, 256  ;;  %p2546_p12 = scmp.lt.s32.totalorder %s269_s21, %s2544_s2 }
  0x44   : > { %p2541_p6 = pnand %p2539_p4, %p2527_p5  ;;  %p2547_p3 = scmp.lt.s32.totalorder %s2545_s3, %s2538_s20 }
  0x46   : > { %p2542_p9 = pneg %p2541_p6  ;;  %p2548_p7 = por %p2547_p3, %p2546_p12 }
  0x48   : > { %p2549_p8 = pnand %p2548_p7, %p2542_p9 }
  0x4a   : > { %2552 = shalt.err (!%p2549_p8)
}
  0x4b   : > { %2399 = dma.hbm_to_vmem [thread:$0]  (!%p2768_p11), %s2766_s19, 128, %s269_s21, %s257_s23  }
  0x4c   : > { %p3900_p10 = scmp.ne.s32.totalorder %s3893_s9, 0 }
  0x4e   : > { %277 = sbr.rel (%p3900_p10) target bundleno = 847 (0x34f), region = 48 }
  0x53   : > { %s2789_s10 = sand.u32 1, %s2613_s25   ;;  %p3901_p8 = scmp.ne.s32.totalorder %s3891_s30, 0 }
  0x54   : > { %s2181_s11 = sshll.u32 %s2789_s10, 3  ;;  %s280_s2 = scalar_lea.sflag [#allocation5], %s2789_s10 }
  0x55   : > { %s2795_s3 = scalar_lea.vmem [#allocation4], %s2181_s11 }
  0x56   : > { %2596 = dma.done.wait (%p3901_p8), %s280_s2, 128  }
  0x57   : > { %2598 = vsyncadd (%p3901_p8), %s280_s2, 4294967168  ;;  %p3902_p11 = scmp.eq.s32.totalorder %s2692_s28, 0 }
  0x59   : > { %2600 = dma.done.wait (%p3902_p11), [#allocation8], 208   ;;  %p3903_p5 = pmov %p3902_p11 }
  0x5a   : > { %vm495_vm0 = vcmask 1043456   ;;  %v322_v0 = vld [vmem:[%s2795_s3] sm:$0xff]  ;;  %v323_v1 = vld [vmem:[%s3841_s1] sm:$0xf]  ;;  %vm398_vm1 = vcmask 31744   ;;  %vm788_vm2 = vcmask 64512   ;;  %v912_v48 = vlaneseq }
  0x5b   : > { %2602 = vsyncadd (%p3903_p5), [#allocation8], 4294967088  ;;  %334 = vxpose.xlu0.b32.start.end [1/1] (short) %v322_v0, 128  ;;  %2327 = vmatprep.subr.msk.mxu0 %vm495_vm0, %v323_v1  ;;  %v2809_v2 = vcombine.high %v322_v0, %v322_v0  ;;  %vm791_vm3 = vcmask 58368   ;;  %v2628_v22 = vmov 0.0   ;;  %v2898_v36 = vld [vmem:[#allocation7] ss:$0 sm:$0xff] }
  0x5c   : > { %2328 = vmatpush3.msk.msra.mxu0 %vm495_vm0, %v323_v1  ;;  %794 = vst.msk [vmem:[#allocation2 + $0x20] sm:$0xff] %vm788_vm2, %v2628_v22  ;;  %789 = vst.msk [vmem:[#allocation2] sm:$0xff] %vm788_vm2, %v2628_v22  ;;  %v913_v53 = vshrl.u32 %v912_v48, 7  ;;  %v877_v61 = vld [vmem:[#allocation9] sm:$0x7]  ;;  %s2259_s2 = sshll.u32 %s2692_s28, 7 }
  0x5d   : > { %3904 = vst [vmem:[#allocation14_spill] sm:$0xff] %v2809_v2  ;;  %795 = vst.msk [vmem:[#allocation2 + $0x28] sm:$0x3] %vm791_vm3, %v2628_v22  ;;  %s321_s9 = scalar_lea.vmem [#allocation10], %s2181_s11  ;;  %s2081_s22 = scalar_lea.hbm %s3847_s7, %s2259_s2 }
  0x5e   : > { %790 = vst.msk [vmem:[#allocation2 + $0x8] sm:$0xff] %vm788_vm2, %v2628_v22  ;;  %793 = vst.msk [vmem:[#allocation2 + $0x18] sm:$0xff] %vm788_vm2, %v2628_v22  ;;  %v914_v58 = vsub.s32 0, %v913_v53  ;;  %v1014_v62 = vsub.s32 1, %v913_v53  ;;  %v1114_v1 = vsub.s32 2, %v913_v53  ;;  %s2083_s19 = sshll.u32 %s321_s9, 4  ;;  %s2084_s19 = int_to_ptr.vmem [resolvable:$true] %s2083_s19 }
  0x5f   : > { %792 = vst.msk [vmem:[#allocation2 + $0x10] sm:$0x3] %vm791_vm3, %v2628_v22  ;;  %798 = vst.msk [vmem:[#allocation2 + $0x40] sm:$0x3] %vm791_vm3, %v2628_v22  ;;  %s2069_s23 = scalar_lea.sflag [#allocation6], %s2789_s10  ;;  %s2553_s13 = scalar_lea.vmem %s2084_s19, 128 }
  0x60   : > { %796 = vst.msk [vmem:[#allocation2 + $0x30] sm:$0xff] %vm788_vm2, %v2628_v22  ;;  %797 = vst.msk [vmem:[#allocation2 + $0x38] sm:$0xff] %vm788_vm2, %v2628_v22  ;;  %p2554_p13 = scmp.ne.s32.totalorder %s2084_s19, %s2553_s13  ;;  %p4010_p0 = scmp.ne.s32.totalorder %s3898_s12, 0 }
  0x61   : > { %799 = vst.msk [vmem:[#allocation2 + $0x48] sm:$0xff] %vm788_vm2, %v2628_v22  ;;  %800 = vst.msk [vmem:[#allocation2 + $0x50] sm:$0xff] %vm788_vm2, %v2628_v22  ;;  %s2630_s28 = smov [#allocation10]  }
  0x62   : > { %801 = vst.msk [vmem:[#allocation2 + $0x58] sm:$0x3] %vm791_vm3, %v2628_v22  ;;  %804 = vst.msk [vmem:[#allocation2 + $0x70] sm:$0x3] %vm791_vm3, %v2628_v22  ;;  %p2555_p1 = pnand %p2554_p13, %p4010_p0  ;;  %s2557_s11 = sshll.u32 %s2630_s28, 4  ;;  %s2558_s11 = int_to_ptr.vmem [resolvable:$false] %s2557_s11 }
  0x63   : > { %802 = vst.msk [vmem:[#allocation2 + $0x60] sm:$0xff] %vm788_vm2, %v2628_v22  ;;  %803 = vst.msk [vmem:[#allocation2 + $0x68] sm:$0xff] %vm788_vm2, %v2628_v22  ;;  %p2560_p4 = scmp.lt.s32.totalorder %s2084_s19, %s2558_s11 }
  0x64   : > { %805 = vst.msk [vmem:[#allocation2 + $0x78] sm:$0xff] %vm788_vm2, %v2628_v22  ;;  %806 = vst.msk [vmem:[#allocation2 + $0x80] sm:$0xff] %vm788_vm2, %v2628_v22  ;;  %p2556_p2 = pneg %p2555_p1 }
  0x65   : > { %807 = vst.msk [vmem:[#allocation2 + $0x88] sm:$0x3] %vm791_vm3, %v2628_v22  ;;  %810 = vst.msk [vmem:[#allocation2 + $0xa0] sm:$0x3] %vm791_vm3, %v2628_v22 }
  0x66   : > { %808 = vst.msk [vmem:[#allocation2 + $0x90] sm:$0xff] %vm788_vm2, %v2628_v22  ;;  %809 = vst.msk [vmem:[#allocation2 + $0x98] sm:$0xff] %vm788_vm2, %v2628_v22 }
  0x67   : > { %811 = vst.msk [vmem:[#allocation2 + $0xa8] sm:$0xff] %vm788_vm2, %v2628_v22  ;;  %812 = vst.msk [vmem:[#allocation2 + $0xb0] sm:$0xff] %vm788_vm2, %v2628_v22 }
  0x68   : > { %813 = vst.msk [vmem:[#allocation2 + $0xb8] sm:$0x3] %vm791_vm3, %v2628_v22  ;;  %816 = vst.msk [vmem:[#allocation2 + $0xd0] sm:$0x3] %vm791_vm3, %v2628_v22 }
  0x69   : > { %814 = vst.msk [vmem:[#allocation2 + $0xc0] sm:$0xff] %vm788_vm2, %v2628_v22  ;;  %815 = vst.msk [vmem:[#allocation2 + $0xc8] sm:$0xff] %vm788_vm2, %v2628_v22 }
  0x6a   : > { %817 = vst.msk [vmem:[#allocation2 + $0xd8] sm:$0xff] %vm788_vm2, %v2628_v22  ;;  %818 = vst.msk [vmem:[#allocation2 + $0xe0] sm:$0xff] %vm788_vm2, %v2628_v22 }
  0x6b   : > { %819 = vst.msk [vmem:[#allocation2 + $0xe8] sm:$0x3] %vm791_vm3, %v2628_v22  ;;  %822 = vst.msk [vmem:[#allocation2 + $0x100] sm:$0x3] %vm791_vm3, %v2628_v22 }
  0x6c   : > { %820 = vst.msk [vmem:[#allocation2 + $0xf0] sm:$0xff] %vm788_vm2, %v2628_v22  ;;  %821 = vst.msk [vmem:[#allocation2 + $0xf8] sm:$0xff] %vm788_vm2, %v2628_v22 }
  0x6d   : > { %823 = vst.msk [vmem:[#allocation2 + $0x108] sm:$0xff] %vm788_vm2, %v2628_v22  ;;  %824 = vst.msk [vmem:[#allocation2 + $0x110] sm:$0xff] %vm788_vm2, %v2628_v22 }
  0x6e   : > { %825 = vst.msk [vmem:[#allocation2 + $0x118] sm:$0x3] %vm791_vm3, %v2628_v22  ;;  %828 = vst.msk [vmem:[#allocation2 + $0x130] sm:$0x3] %vm791_vm3, %v2628_v22 }
  0x6f   : > { %826 = vst.msk [vmem:[#allocation2 + $0x120] sm:$0xff] %vm788_vm2, %v2628_v22  ;;  %827 = vst.msk [vmem:[#allocation2 + $0x128] sm:$0xff] %vm788_vm2, %v2628_v22 }
  0x70   : > { %829 = vst.msk [vmem:[#allocation2 + $0x138] sm:$0xff] %vm788_vm2, %v2628_v22  ;;  %830 = vst.msk [vmem:[#allocation2 + $0x140] sm:$0xff] %vm788_vm2, %v2628_v22 }
  0x71   : > { %831 = vst.msk [vmem:[#allocation2 + $0x148] sm:$0x3] %vm791_vm3, %v2628_v22  ;;  %834 = vst.msk [vmem:[#allocation2 + $0x160] sm:$0x3] %vm791_vm3, %v2628_v22 }
  0x72   : > { %832 = vst.msk [vmem:[#allocation2 + $0x150] sm:$0xff] %vm788_vm2, %v2628_v22  ;;  %833 = vst.msk [vmem:[#allocation2 + $0x158] sm:$0xff] %vm788_vm2, %v2628_v22 }
  0x73   : > { %835 = vst.msk [vmem:[#allocation2 + $0x168] sm:$0xff] %vm788_vm2, %v2628_v22  ;;  %836 = vst.msk [vmem:[#allocation2 + $0x170] sm:$0xff] %vm788_vm2, %v2628_v22 }
  0x74   : > { %837 = vst.msk [vmem:[#allocation2 + $0x178] sm:$0x3] %vm791_vm3, %v2628_v22  ;;  %840 = vst.msk [vmem:[#allocation2 + $0x190] sm:$0x3] %vm791_vm3, %v2628_v22 }
  0x75   : > { %838 = vst.msk [vmem:[#allocation2 + $0x180] sm:$0xff] %vm788_vm2, %v2628_v22  ;;  %839 = vst.msk [vmem:[#allocation2 + $0x188] sm:$0xff] %vm788_vm2, %v2628_v22 }
  0x76   : > { %841 = vst.msk [vmem:[#allocation2 + $0x198] sm:$0xff] %vm788_vm2, %v2628_v22  ;;  %842 = vst.msk [vmem:[#allocation2 + $0x1a0] sm:$0xff] %vm788_vm2, %v2628_v22 }
  0x77   : > { %843 = vst.msk [vmem:[#allocation2 + $0x1a8] sm:$0x3] %vm791_vm3, %v2628_v22 }
  0x98   : > { %366 = vxpose.xlu0.b32.start.end [1/1] (short) %v2809_v2, 128 }
  0xd7   : > { %v350_v3 = vpop.trf.xlu0 }
  0xd8   : > { %2329 = vmatprep.mubr.msk.f32.mxu0 %vm398_vm1, %v350_v3 }
  0xdb   : > { %v351_v4 = vpop.trf.xlu0 }
  0xdc   : > { %2330 = vmatmul.mubr.msk.f32.vlgmr.msra.gmra.mxu0 %vm398_vm1, %v351_v4  ;;  %v2910_v4 = vrot.slane %v877_v61, %v914_v58 }
  0xde   : > { %3905 = vst [vmem:[#allocation15_spill] sm:$0xff] %v2910_v4 }
  0xdf   : > { %v352_v5 = vpop.trf.xlu0 }
  0xe0   : > { %2332 = vmatprep.mubr.msk.f32.mxu0 %vm398_vm1, %v352_v5 }
  0xe3   : > { %v353_v6 = vpop.trf.xlu0 }
  0xe4   : > { %2333 = vmatmul.mubr.msk.f32.gmra.mxu0 %vm398_vm1, %v353_v6  ;;  %v878_v6 = vld [vmem:[#allocation9 + $0x4] sm:$0x7] }
  0xe7   : > { %v354_v7 = vpop.trf.xlu0 }
  0xe8   : > { %2335 = vmatprep.mubr.msk.f32.mxu0 %vm398_vm1, %v354_v7 }
  0xeb   : > { %v355_v8 = vpop.trf.xlu0 }
  0xec   : > { %2336 = vmatmul.mubr.msk.f32.gmra.mxu0 %vm398_vm1, %v355_v8 }
  0xef   : > { %v356_v9 = vpop.trf.xlu0 }
  0xf0   : > { %2338 = vmatprep.mubr.msk.f32.mxu0 %vm398_vm1, %v356_v9  ;;  %v2913_v9 = vrot.slane %v877_v61, %v1014_v62 }
  0xf2   : > { %3906 = vst [vmem:[#allocation16_spill] sm:$0xff] %v2913_v9 }
  0xf3   : > { %v357_v10 = vpop.trf.xlu0 }
  0xf4   : > { %2339 = vmatmul.mubr.msk.f32.gmra.mxu0 %vm398_vm1, %v357_v10 }
  0xf7   : > { %v358_v11 = vpop.trf.xlu0 }
  0xf8   : > { %2341 = vmatprep.mubr.msk.f32.mxu0 %vm398_vm1, %v358_v11 }
  0xfb   : > { %v359_v12 = vpop.trf.xlu0 }
  0xfc   : > { %2342 = vmatmul.mubr.msk.f32.gmra.mxu0 %vm398_vm1, %v359_v12 }
  0xff   : > { %v360_v13 = vpop.trf.xlu0 }
 0x100   : > { %2344 = vmatprep.mubr.msk.f32.mxu0 %vm398_vm1, %v360_v13 }
 0x103   : > { %v361_v14 = vpop.trf.xlu0 }
 0x104   : > { %2345 = vmatmul.mubr.msk.f32.gmra.mxu0 %vm398_vm1, %v361_v14  ;;  %v879_v14 = vld [vmem:[#allocation9 + $0x8] sm:$0x7] }
 0x107   : > { %v362_v15 = vpop.trf.xlu0 }
 0x108   : > { %2347 = vmatprep.mubr.msk.f32.mxu0 %vm398_vm1, %v362_v15  ;;  %v2918_v15 = vrot.slane %v877_v61, %v1114_v1 }
 0x10a   : > { %3907 = vst [vmem:[#allocation17_spill] sm:$0xff] %v2918_v15 }
 0x10b   : > { %v363_v16 = vpop.trf.xlu0 }
 0x10c   : > { %2348 = vmatmul.mubr.msk.f32.gmra.mxu0 %vm398_vm1, %v363_v16 }
 0x10f   : > { %v364_v17 = vpop.trf.xlu0 }
 0x110   : > { %2350 = vmatprep.mubr.msk.f32.mxu0 %vm398_vm1, %v364_v17  ;;  %v2920_v17 = vrot.slane %v878_v6, %v1014_v62 }
 0x113   : > { %v365_v18 = vpop.trf.xlu0 }
 0x114   : > { %2351 = vmatmul.mubr.msk.f32.gmra.mxu0 %vm398_vm1, %v365_v18  ;;  %v2922_v18 = vrot.slane %v878_v6, %v1114_v1 }
 0x117   : > { %v382_v19 = vpop.trf.xlu0 }
 0x118   : > { %2353 = vmatprep.mubr.msk.f32.mxu0 %vm398_vm1, %v382_v19  ;;  %v1512_v19 = vld [vmem:[#allocation2 + $0x1a0] sm:$0xff] }
 0x11b   : > { %v383_v20 = vpop.trf.xlu0 }
 0x11c   : > { %2354 = vmatmul.mubr.msk.f32.gmra.mxu0 %vm398_vm1, %v383_v20  ;;  %v2924_v20 = vrot.slane %v879_v14, %v914_v58 }
 0x11f   : > { %v384_v21 = vpop.trf.xlu0 }
 0x120   : > { %2356 = vmatprep.mubr.msk.f32.mxu0 %vm398_vm1, %v384_v21 }
 0x123   : > { %v385_v23 = vpop.trf.xlu0 }
 0x124   : > { %2357 = vmatmul.mubr.msk.f32.gmra.mxu0 %vm398_vm1, %v385_v23 }
 0x127   : > { %v386_v24 = vpop.trf.xlu0 }
 0x128   : > { %2359 = vmatprep.mubr.msk.f32.mxu0 %vm398_vm1, %v386_v24 }
 0x12b   : > { %v387_v25 = vpop.trf.xlu0 }
 0x12c   : > { %2360 = vmatmul.mubr.msk.f32.gmra.mxu0 %vm398_vm1, %v387_v25  ;;  %v1612_v25 = vld [vmem:[#allocation2 + $0x1a1] sm:$0xff] }
 0x12f   : > { %v388_v26 = vpop.trf.xlu0 }
 0x130   : > { %2362 = vmatprep.mubr.msk.f32.mxu0 %vm398_vm1, %v388_v26  ;;  %v1511_v26 = vld [vmem:[#allocation2 + $0x198] sm:$0xff] }
 0x133   : > { %v389_v27 = vpop.trf.xlu0 }
 0x134   : > { %2363 = vmatmul.mubr.msk.f32.gmra.mxu0 %vm398_vm1, %v389_v27 }
 0x137   : > { %v390_v28 = vpop.trf.xlu0 }
 0x138   : > { %2365 = vmatprep.mubr.msk.f32.mxu0 %vm398_vm1, %v390_v28 }
 0x13b   : > { %v391_v29 = vpop.trf.xlu0 }
 0x13c   : > { %2366 = vmatmul.mubr.msk.f32.gmra.mxu0 %vm398_vm1, %v391_v29 }
 0x13f   : > { %v392_v30 = vpop.trf.xlu0 }
 0x140   : > { %2368 = vmatprep.mubr.msk.f32.mxu0 %vm398_vm1, %v392_v30  ;;  %v2930_v30 = vrot.slane %v878_v6, %v914_v58 }
 0x142   : > { %3908 = vst [vmem:[#allocation18_spill] sm:$0xff] %v2930_v30 }
 0x143   : > { %v393_v31 = vpop.trf.xlu0 }
 0x144   : > { %2369 = vmatmul.mubr.msk.f32.gmra.mxu0 %vm398_vm1, %v393_v31  ;;  %v2932_v31 = vrot.slane %v879_v14, %v1014_v62 }
 0x147   : > { %v394_v32 = vpop.trf.xlu0 }
 0x148   : > { %2371 = vmatprep.mubr.msk.f32.mxu0 %vm398_vm1, %v394_v32  ;;  %v2934_v32 = vrot.slane %v879_v14, %v1114_v1  ;;  %v881_v1 = vld [vmem:[#allocation2 + $0x8] sm:$0xff] }
 0x14b   : > { %v395_v33 = vpop.trf.xlu0 }
 0x14c   : > { %2372 = vmatmul.mubr.msk.f32.gmra.mxu0 %vm398_vm1, %v395_v33 }
 0x14f   : > { %v396_v34 = vpop.trf.xlu0 }
 0x150   : > { %2374 = vmatprep.mubr.msk.f32.mxu0 %vm398_vm1, %v396_v34 }
 0x153   : > { %v397_v35 = vpop.trf.xlu0 }
 0x154   : > { %2375 = vmatmul.mubr.msk.f32.gmra.mxu0 %vm398_vm1, %v397_v35 }
 0x19c   : > { %v2331_v37 = vpop.f32.mrf.mxu0 }
 0x19d   : > { %v571_v38 = vadd.f32 %v2331_v37, %v2898_v36 }
 0x19e   : > { %v565_v39 = vpop.f32.mrf.mxu0 }
 0x19f   : > { %v725_v40 = vmax.f32 %v571_v38, 0.0  ;;  %v566_v41 = vadd.f32 %v2898_v36, %v565_v39  ;;  %v2937_v39 = vmul.f32 %v2924_v20, %v1512_v19 }
 0x1a1   : > { %v757_v42 = vmin.f32 %v725_v40, 6.0  ;;  %v724_v43 = vmax.f32 %v566_v41, 0.0  ;;  %3909 = vst [vmem:[#allocation19_spill] sm:$0xff] %v2937_v39  ;;  %v1712_v40 = vld [vmem:[#allocation2 + $0x1a2] sm:$0xff]  ;;  %v1611_v41 = vld [vmem:[#allocation2 + $0x199] sm:$0xff] }
 0x1a3   : > { %846 = vst.msk [vmem:[#allocation2 + $0x21] sm:$0xff] %vm788_vm2, %v757_v42  ;;  %v756_v44 = vmin.f32 %v724_v43, 6.0 }
 0x1a4   : > { %v2334_v45 = vpop.f32.mrf.mxu0 }
 0x1a5   : > { %845 = vst.msk [vmem:[#allocation2 + $0x19] sm:$0xff] %vm788_vm2, %v756_v44  ;;  %v581_v46 = vadd.f32 %v2334_v45, %v2898_v36  ;;  %v2941_v44 = vmul.f32 %v2932_v31, %v1612_v25  ;;  %v2944_v45 = vmul.f32 %v2924_v20, %v1511_v26 }
 0x1a6   : > { %v575_v47 = vpop.f32.mrf.mxu0 }
 0x1a7   : > { %v727_v49 = vmax.f32 %v581_v46, 0.0  ;;  %v576_v50 = vadd.f32 %v2898_v36, %v575_v47  ;;  %3910 = vst [vmem:[#allocation20_spill] sm:$0xff] %v2941_v44  ;;  %3911 = vst [vmem:[#allocation21_spill] sm:$0xff] %v2944_v45  ;;  %v1711_v46 = vld [vmem:[#allocation2 + $0x19a] sm:$0xff] }
 0x1a8   : > { %v2961_v61 = vmul.f32 %v2934_v32, %v1711_v46 }
 0x1a9   : > { %v759_v51 = vmin.f32 %v727_v49, 6.0  ;;  %v726_v52 = vmax.f32 %v576_v50, 0.0 }
 0x1aa   : > { %v983_v7 = vld [vmem:[#allocation2 + $0x21] sm:$0xff]  ;;  %3914 = vst [vmem:[#allocation24_spill] sm:$0xff] %v2961_v61 }
 0x1ab   : > { %848 = vst.msk [vmem:[#allocation2 + $0x39] sm:$0xff] %vm788_vm2, %v759_v51  ;;  %v758_v54 = vmin.f32 %v726_v52, 6.0  ;;  %v1019_v21 = vmul.f32 %v2913_v9, %v983_v7  ;;  %v1083_v22 = vld [vmem:[#allocation2 + $0x22] sm:$0xff] }
 0x1ac   : > { %v2337_v55 = vpop.f32.mrf.mxu0  ;;  %v883_v3 = vld [vmem:[#allocation2 + $0x20] sm:$0xff]  ;;  %v882_v11 = vld [vmem:[#allocation2 + $0x18] sm:$0xff]  ;;  %v1119_v43 = vmul.f32 %v2918_v15, %v1083_v22 }
 0x1ad   : > { %847 = vst.msk [vmem:[#allocation2 + $0x31] sm:$0xff] %vm788_vm2, %v758_v54  ;;  %v591_v56 = vadd.f32 %v2337_v55, %v2898_v36  ;;  %v919_v10 = vmul.f32 %v2910_v4, %v883_v3  ;;  %v982_v12 = vld [vmem:[#allocation2 + $0x19] sm:$0xff]  ;;  %v918_v28 = vmul.f32 %v2910_v4, %v882_v11  ;;  %v981_v3 = vld [vmem:[#allocation2 + $0x9] sm:$0xff] }
 0x1ae   : > { %v585_v57 = vpop.f32.mrf.mxu0  ;;  %v1018_v29 = vmul.f32 %v2913_v9, %v982_v12  ;;  %v1082_v50 = vld [vmem:[#allocation2 + $0x1a] sm:$0xff]  ;;  %v1017_v25 = vmul.f32 %v2913_v9, %v981_v3 }
 0x1af   : > { %v729_v59 = vmax.f32 %v591_v56, 0.0  ;;  %v586_v60 = vadd.f32 %v2898_v36, %v585_v57  ;;  %v1051_v35 = vadd.f32 %v1019_v21, %v919_v10  ;;  %v2952_v56 = vmul.f32 %v2934_v32, %v1712_v40 }
 0x1b0   : > { %v1050_v54 = vadd.f32 %v1018_v29, %v918_v28  ;;  %v2955_v57 = vmul.f32 %v2932_v31, %v1611_v41 }
 0x1b1   : > { %v761_v63 = vmin.f32 %v729_v59, 6.0  ;;  %v728_v0 = vmax.f32 %v586_v60, 0.0  ;;  %3912 = vst [vmem:[#allocation22_spill] sm:$0xff] %v2952_v56  ;;  %v1151_v59 = vadd.f32 %v1119_v43, %v1051_v35 }
 0x1b2   : > { %v985_v42 = vld [vmem:[#allocation2 + $0x39] sm:$0xff]  ;;  %3913 = vst [vmem:[#allocation23_spill] sm:$0xff] %v2955_v57 }
 0x1b3   : > { %850 = vst.msk [vmem:[#allocation2 + $0x51] sm:$0xff] %vm788_vm2, %v761_v63  ;;  %v760_v5 = vmin.f32 %v728_v0, 6.0  ;;  %v1085_v48 = vld [vmem:[#allocation2 + $0x3a] sm:$0xff]  ;;  %v1021_v58 = vmul.f32 %v2913_v9, %v985_v42  ;;  %v1118_v0 = vmul.f32 %v2918_v15, %v1082_v50 }
 0x1b4   : > { %v2340_v8 = vpop.f32.mrf.mxu0  ;;  %v885_v27 = vld [vmem:[#allocation2 + $0x38] sm:$0xff]  ;;  %v884_v33 = vld [vmem:[#allocation2 + $0x30] sm:$0xff]  ;;  %v1121_v62 = vmul.f32 %v2918_v15, %v1085_v48  ;;  %v1419_v10 = vmul.f32 %v2922_v18, %v1085_v48 }
 0x1b5   : > { %849 = vst.msk [vmem:[#allocation2 + $0x49] sm:$0xff] %vm788_vm2, %v760_v5  ;;  %v601_v13 = vadd.f32 %v2340_v8, %v2898_v36  ;;  %v984_v34 = vld [vmem:[#allocation2 + $0x31] sm:$0xff]  ;;  %v921_v47 = vmul.f32 %v2910_v4, %v885_v27  ;;  %v1219_v49 = vmul.f32 %v2930_v30, %v885_v27  ;;  %v920_v52 = vmul.f32 %v2910_v4, %v884_v33 }
 0x1b6   : > { %v595_v16 = vpop.f32.mrf.mxu0  ;;  %v1020_v53 = vmul.f32 %v2913_v9, %v984_v34  ;;  %v1084_v63 = vld [vmem:[#allocation2 + $0x32] sm:$0xff]  ;;  %v1319_v8 = vmul.f32 %v2920_v17, %v985_v42  ;;  %v1318_v29 = vmul.f32 %v2920_v17, %v984_v34 }
 0x1b7   : > { %v731_v23 = vmax.f32 %v601_v13, 0.0  ;;  %v596_v24 = vadd.f32 %v2898_v36, %v595_v16  ;;  %v1053_v6 = vadd.f32 %v1021_v58, %v921_v47  ;;  %v1251_v7 = vadd.f32 %v1219_v49, %v1151_v59 }
 0x1b8   : > { %v1052_v14 = vadd.f32 %v1020_v53, %v920_v52  ;;  %v1150_v16 = vadd.f32 %v1118_v0, %v1050_v54  ;;  %v1120_v22 = vmul.f32 %v2918_v15, %v1084_v63  ;;  %v2974_v35 = vmul.f32 %v2922_v18, %v1084_v63 }
 0x1b9   : > { %v763_v37 = vmin.f32 %v731_v23, 6.0  ;;  %v730_v38 = vmax.f32 %v596_v24, 0.0  ;;  %v1218_v23 = vmul.f32 %v2930_v30, %v884_v33  ;;  %v917_v24 = vmul.f32 %v2910_v4, %v881_v1  ;;  %v1081_v33 = vld [vmem:[#allocation2 + $0xa] sm:$0xff] }
 0x1ba   : > { %v987_v28 = vld [vmem:[#allocation2 + $0x51] sm:$0xff]  ;;  %3915 = vst [vmem:[#allocation25_spill] sm:$0xff] %v2974_v35  ;;  %v1153_v40 = vadd.f32 %v1121_v62, %v1053_v6  ;;  %v1351_v42 = vadd.f32 %v1319_v8, %v1251_v7  ;;  %v1152_v48 = vadd.f32 %v1120_v22, %v1052_v14  ;;  %v2990_v59 = vmul.f32 %v2918_v15, %v1081_v33 }
 0x1bb   : > { %852 = vst.msk [vmem:[#allocation2 + $0x69] sm:$0xff] %vm788_vm2, %v763_v37  ;;  %v762_v51 = vmin.f32 %v730_v38, 6.0  ;;  %v1087_v38 = vld [vmem:[#allocation2 + $0x52] sm:$0xff]  ;;  %v1023_v49 = vmul.f32 %v2913_v9, %v987_v28  ;;  %v2983_v52 = vadd.f32 %v1017_v25, %v917_v24  ;;  %v1321_v58 = vmul.f32 %v2920_v17, %v987_v28 }
 0x1bc   : > { %v2343_v55 = vpop.f32.mrf.mxu0  ;;  %v887_v13 = vld [vmem:[#allocation2 + $0x50] sm:$0xff]  ;;  %v886_v19 = vld [vmem:[#allocation2 + $0x48] sm:$0xff]  ;;  %v1123_v54 = vmul.f32 %v2918_v15, %v1087_v38  ;;  %3917 = vst [vmem:[#allocation27_spill] sm:$0xff] %v2990_v59  ;;  %v1421_v0 = vmul.f32 %v2922_v18, %v1087_v38  ;;  %v1451_v1 = vadd.f32 %v1419_v10, %v1351_v42  ;;  %v2997_v8 = vmul.f32 %v2932_v31, %v987_v28 }
 0x1bd   : > { %851 = vst.msk [vmem:[#allocation2 + $0x61] sm:$0xff] %vm788_vm2, %v762_v51  ;;  %v611_v60 = vadd.f32 %v2343_v55, %v2898_v36  ;;  %v986_v21 = vld [vmem:[#allocation2 + $0x49] sm:$0xff]  ;;  %v923_v37 = vmul.f32 %v2910_v4, %v887_v13  ;;  %v1221_v41 = vmul.f32 %v2930_v30, %v887_v13  ;;  %v922_v46 = vmul.f32 %v2910_v4, %v886_v19 }
 0x1be   : > { %v605_v5 = vpop.f32.mrf.mxu0  ;;  %v1022_v47 = vmul.f32 %v2913_v9, %v986_v21  ;;  %v1220_v50 = vmul.f32 %v2930_v30, %v886_v19  ;;  %v1250_v51 = vadd.f32 %v1218_v23, %v1150_v16  ;;  %3916 = vst [vmem:[#allocation26_spill] sm:$0xff] %v2983_v52  ;;  %v1086_v55 = vld [vmem:[#allocation2 + $0x4a] sm:$0xff]  ;;  %3918 = vst [vmem:[#allocation28_spill] sm:$0xff] %v2997_v8 }
 0x1bf   : > { %v733_v11 = vmax.f32 %v611_v60, 0.0  ;;  %v606_v12 = vadd.f32 %v2898_v36, %v605_v5  ;;  %v1055_v62 = vadd.f32 %v1023_v49, %v923_v37  ;;  %v1253_v63 = vadd.f32 %v1221_v41, %v1153_v40 }
 0x1c0   : > { %v1054_v7 = vadd.f32 %v1022_v47, %v922_v46  ;;  %v1122_v14 = vmul.f32 %v2918_v15, %v1086_v55  ;;  %v1252_v16 = vadd.f32 %v1220_v50, %v1152_v48  ;;  %v1520_v19 = vmul.f32 %v2924_v20, %v887_v13 }
 0x1c1   : > { %v765_v26 = vmin.f32 %v733_v11, 6.0  ;;  %v732_v27 = vmax.f32 %v606_v12, 0.0  ;;  %v3001_v22 = vadd.f32 %v1318_v29, %v1250_v51  ;;  %v1320_v25 = vmul.f32 %v2920_v17, %v986_v21 }
 0x1c2   : > { %v989_v24 = vld [vmem:[#allocation2 + $0x69] sm:$0xff]  ;;  %v1155_v37 = vadd.f32 %v1123_v54, %v1055_v62  ;;  %v1353_v41 = vadd.f32 %v1321_v58, %v1253_v63  ;;  %v1154_v21 = vadd.f32 %v1122_v14, %v1054_v7  ;;  %v3017_v47 = vadd.f32 %v1520_v19, %v1451_v1 }
 0x1c3   : > { %854 = vst.msk [vmem:[#allocation2 + $0x81] sm:$0xff] %vm788_vm2, %v765_v26  ;;  %v764_v43 = vmin.f32 %v732_v27, 6.0  ;;  %3919 = vst [vmem:[#allocation29_spill] sm:$0xff] %v3001_v22  ;;  %v3005_v26 = vmul.f32 %v2922_v18, %v1086_v55  ;;  %v1089_v28 = vld [vmem:[#allocation2 + $0x6a] sm:$0xff]  ;;  %v3015_v46 = vadd.f32 %v1320_v25, %v1252_v16  ;;  %v3020_v48 = vmul.f32 %v2934_v32, %v1087_v38 }
 0x1c4   : > { %v2346_v34 = vpop.f32.mrf.mxu0  ;;  %v2994_v6 = vld [vmem:[#allocation2 + $0x68] sm:$0xff]  ;;  %v888_v11 = vld [vmem:[#allocation2 + $0x60] sm:$0xff]  ;;  %3922 = vst [vmem:[#allocation32_spill] sm:$0xff] %v3017_v47  ;;  %v1125_v51 = vmul.f32 %v2918_v15, %v1089_v28  ;;  %v1323_v54 = vmul.f32 %v2920_v17, %v989_v24  ;;  %v1423_v55 = vmul.f32 %v2922_v18, %v1089_v28  ;;  %v3031_v63 = vadd.f32 %v1421_v0, %v1353_v41 }
 0x1c5   : > { %853 = vst.msk [vmem:[#allocation2 + $0x79] sm:$0xff] %vm788_vm2, %v764_v43  ;;  %v621_v53 = vadd.f32 %v2346_v34, %v2898_v36  ;;  %v988_v12 = vld [vmem:[#allocation2 + $0x61] sm:$0xff]  ;;  %3920 = vst [vmem:[#allocation30_spill] sm:$0xff] %v3005_v26  ;;  %v925_v27 = vmul.f32 %v2910_v4, %v2994_v6  ;;  %v1223_v40 = vmul.f32 %v2930_v30, %v2994_v6 }
 0x1c6   : > { %v615_v60 = vpop.f32.mrf.mxu0  ;;  %v924_v29 = vmul.f32 %v2910_v4, %v888_v11  ;;  %v1024_v42 = vmul.f32 %v2913_v9, %v988_v12  ;;  %v1025_v43 = vmul.f32 %v2913_v9, %v989_v24  ;;  %3921 = vst [vmem:[#allocation31_spill] sm:$0xff] %v3015_v46  ;;  %3923 = vst [vmem:[#allocation33_spill] sm:$0xff] %v3020_v48 }
 0x1c7   : > { %v735_v3 = vmax.f32 %v621_v53, 0.0  ;;  %v616_v5 = vadd.f32 %v2898_v36, %v615_v60  ;;  %v1088_v53 = vld [vmem:[#allocation2 + $0x62] sm:$0xff]  ;;  %v1255_v38 = vadd.f32 %v1223_v40, %v1155_v37  ;;  %v3034_v1 = vmul.f32 %v2932_v31, %v989_v24 }
 0x1c8   : > { %v1057_v62 = vadd.f32 %v1025_v43, %v925_v27  ;;  %v1056_v14 = vadd.f32 %v1024_v42, %v924_v29  ;;  %v1222_v16 = vmul.f32 %v2930_v30, %v888_v11  ;;  %v1124_v0 = vmul.f32 %v2918_v15, %v1088_v53 }
 0x1c9   : > { %v767_v23 = vmin.f32 %v735_v3, 6.0  ;;  %v734_v10 = vmax.f32 %v616_v5, 0.0  ;;  %3925 = vst [vmem:[#allocation35_spill] sm:$0xff] %v3034_v1  ;;  %v3051_v29 = vmul.f32 %v2934_v32, %v1089_v28  ;;  %v3066_v28 = vmul.f32 %v2924_v20, %v2994_v6 }
 0x1ca   : > { %v991_v7 = vld [vmem:[#allocation2 + $0x81] sm:$0xff]  ;;  %v1157_v41 = vadd.f32 %v1125_v51, %v1057_v62  ;;  %v3054_v43 = vadd.f32 %v1222_v16, %v1154_v21  ;;  %v3062_v51 = vmul.f32 %v2922_v18, %v1088_v53 }
 0x1cb   : > { %856 = vst.msk [vmem:[#allocation2 + $0x99] sm:$0xff] %vm788_vm2, %v767_v23  ;;  %v766_v13 = vmin.f32 %v734_v10, 6.0  ;;  %v1027_v40 = vmul.f32 %v2913_v9, %v991_v7  ;;  %v3048_v11 = vld [vmem:[#allocation2 + $0x82] sm:$0xff]  ;;  %3926 = vst [vmem:[#allocation36_spill] sm:$0xff] %v3051_v29 }
 0x1cc   : > { %v2349_v33 = vpop.f32.mrf.mxu0  ;;  %v891_v49 = vld [vmem:[#allocation2 + $0x80] sm:$0xff]  ;;  %v3024_v50 = vld [vmem:[#allocation2 + $0x78] sm:$0xff]  ;;  %v1425_v53 = vmul.f32 %v2922_v18, %v3048_v11 }
 0x1cd   : > { %855 = vst.msk [vmem:[#allocation2 + $0x91] sm:$0xff] %vm788_vm2, %v766_v13  ;;  %v631_v34 = vadd.f32 %v2349_v33, %v2898_v36  ;;  %v3029_v60 = vld [vmem:[#allocation2 + $0x79] sm:$0xff]  ;;  %v927_v19 = vmul.f32 %v2910_v4, %v891_v49  ;;  %v926_v23 = vmul.f32 %v2910_v4, %v3024_v50  ;;  %v1225_v10 = vmul.f32 %v2930_v30, %v891_v49 }
 0x1ce   : > { %v625_v58 = vpop.f32.mrf.mxu0  ;;  %3924 = vst [vmem:[#allocation34_spill] sm:$0xff] %v3029_v60  ;;  %v1026_v24 = vmul.f32 %v2913_v9, %v3029_v60  ;;  %v1224_v37 = vmul.f32 %v2930_v30, %v3024_v50  ;;  %v1355_v13 = vadd.f32 %v1323_v54, %v1255_v38  ;;  %v1156_v33 = vadd.f32 %v1124_v0, %v1056_v14 }
 0x1cf   : > { %v737_v3 = vmax.f32 %v631_v34, 0.0  ;;  %v626_v5 = vadd.f32 %v2898_v36, %v625_v58  ;;  %v3057_v34 = vmul.f32 %v2920_v17, %v988_v12  ;;  %v1257_v2 = vadd.f32 %v1225_v10, %v1157_v41 }
 0x1d0   : > { %v1127_v12 = vmul.f32 %v2918_v15, %v3048_v11  ;;  %v1058_v54 = vadd.f32 %v1026_v24, %v926_v23  ;;  %v1256_v62 = vadd.f32 %v1224_v37, %v1156_v33  ;;  %v1325_v14 = vmul.f32 %v2920_v17, %v991_v7 }
 0x1d1   : > { %v769_v25 = vmin.f32 %v737_v3, 6.0  ;;  %v736_v27 = vmax.f32 %v626_v5, 0.0  ;;  %v1059_v3 = vadd.f32 %v1027_v40, %v927_v19  ;;  %v3059_v5 = vld [vmem:[#allocation2 + $0x7a] sm:$0xff]  ;;  %v1455_v16 = vadd.f32 %v1423_v55, %v1355_v13 }
 0x1d2   : > { %3927 = vst [vmem:[#allocation37_spill] sm:$0xff] %v3059_v5  ;;  %v1524_v19 = vmul.f32 %v2924_v20, %v891_v49  ;;  %v1126_v23 = vmul.f32 %v2918_v15, %v3059_v5  ;;  %v1324_v24 = vmul.f32 %v2920_v17, %v3029_v60  ;;  %v993_v37 = vld [vmem:[#allocation2 + $0x99] sm:$0xff]  ;;  %v1357_v49 = vadd.f32 %v1325_v14, %v1257_v2 }
 0x1d3   : > { %858 = vst.msk [vmem:[#allocation2 + $0xb1] sm:$0xff] %vm788_vm2, %v769_v25  ;;  %v768_v42 = vmin.f32 %v736_v27, 6.0  ;;  %v3087_v40 = vld [vmem:[#allocation2 + $0x9a] sm:$0xff]  ;;  %v1159_v55 = vadd.f32 %v1127_v12, %v1059_v3  ;;  %v3091_v41 = vmul.f32 %v2922_v18, %v3059_v5  ;;  %v3094_v13 = vmul.f32 %v2932_v31, %v991_v7 }
 0x1d4   : > { %v2352_v58 = vpop.f32.mrf.mxu0  ;;  %v3077_v0 = vld [vmem:[#allocation2 + $0x98] sm:$0xff]  ;;  %v3079_v25 = vld [vmem:[#allocation2 + $0x90] sm:$0xff]  ;;  %v3104_v3 = vadd.f32 %v1524_v19, %v1455_v16  ;;  %v1327_v19 = vmul.f32 %v2920_v17, %v993_v37  ;;  %v3127_v22 = vadd.f32 %v1425_v53, %v1357_v49  ;;  %v3139_v53 = vmul.f32 %v2932_v31, %v993_v37 }
 0x1d5   : > { %857 = vst.msk [vmem:[#allocation2 + $0xa9] sm:$0xff] %vm788_vm2, %v768_v42  ;;  %v641_v21 = vadd.f32 %v2352_v58, %v2898_v36  ;;  %v3081_v27 = vld [vmem:[#allocation2 + $0x91] sm:$0xff]  ;;  %v1158_v58 = vadd.f32 %v1126_v23, %v1058_v54  ;;  %v928_v35 = vmul.f32 %v2910_v4, %v3079_v25  ;;  %v1029_v54 = vmul.f32 %v2913_v9, %v993_v37 }
 0x1d6   : > { %v635_v38 = vpop.f32.mrf.mxu0  ;;  %v1028_v2 = vmul.f32 %v2913_v9, %v3081_v27  ;;  %v3112_v14 = vld [vmem:[#allocation2 + $0x92] sm:$0xff] }
 0x1d7   : > { %v739_v6 = vmax.f32 %v641_v21, 0.0  ;;  %v636_v10 = vadd.f32 %v2898_v36, %v635_v38  ;;  %v3096_v21 = vadd.f32 %v1324_v24, %v1256_v62  ;;  %v929_v38 = vmul.f32 %v2910_v4, %v3077_v0 }
 0x1d8   : > { %v1129_v62 = vmul.f32 %v2918_v15, %v3087_v40  ;;  %v1060_v61 = vadd.f32 %v1028_v2, %v928_v35  ;;  %v1128_v56 = vmul.f32 %v2918_v15, %v3112_v14 }
 0x1d9   : > { %v771_v42 = vmin.f32 %v739_v6, 6.0  ;;  %v738_v33 = vmax.f32 %v636_v10, 0.0  ;;  %v1227_v6 = vmul.f32 %v2930_v30, %v3077_v0  ;;  %v1061_v1 = vadd.f32 %v1029_v54, %v929_v38 }
 0x1da   : > { %v3107_v12 = vld [vmem:[#allocation2 + $0xb1] sm:$0xff] }
 0x1db   : > { %860 = vst.msk [vmem:[#allocation2 + $0xc9] sm:$0xff] %vm788_vm2, %v771_v42  ;;  %v770_v7 = vmin.f32 %v738_v33, 6.0  ;;  %v3123_v42 = vmul.f32 %v2922_v18, %v3087_v40  ;;  %v1226_v33 = vmul.f32 %v2930_v30, %v3079_v25  ;;  %v1031_v29 = vmul.f32 %v2913_v9, %v3107_v12 }
 0x1dc   : > { %v2355_v10 = vpop.f32.mrf.mxu0  ;;  %v895_v23 = vld [vmem:[#allocation2 + $0xb0] sm:$0xff]  ;;  %v3116_v24 = vld [vmem:[#allocation2 + $0xa8] sm:$0xff]  ;;  %v1259_v57 = vadd.f32 %v1227_v6, %v1159_v55  ;;  %v1161_v5 = vadd.f32 %v1129_v62, %v1061_v1  ;;  %v1160_v55 = vadd.f32 %v1128_v56, %v1060_v61 }
 0x1dd   : > { %v3118_v16 = vld [vmem:[#allocation2 + $0xa9] sm:$0xff]  ;;  %859 = vst.msk [vmem:[#allocation2 + $0xc1] sm:$0xff] %vm788_vm2, %v770_v7  ;;  %v651_v48 = vadd.f32 %v2355_v10, %v2898_v36  ;;  %v931_v59 = vmul.f32 %v2910_v4, %v895_v23  ;;  %v930_v52 = vmul.f32 %v2910_v4, %v3116_v24  ;;  %v3142_v10 = vld [vmem:[#allocation2 + $0xb2] sm:$0xff]  ;;  %v1229_v39 = vmul.f32 %v2930_v30, %v895_v23 }
 0x1de   : > { %v1030_v8 = vmul.f32 %v2913_v9, %v3118_v16  ;;  %v645_v47 = vpop.f32.mrf.mxu0  ;;  %v3146_v45 = vld [vmem:[#allocation2 + $0xaa] sm:$0xff]  ;;  %v1228_v35 = vmul.f32 %v2930_v30, %v3116_v24  ;;  %v1258_v38 = vadd.f32 %v1226_v33, %v1158_v58  ;;  %v1131_v54 = vmul.f32 %v2918_v15, %v3142_v10 }
 0x1df   : > { %v741_v49 = vmax.f32 %v651_v48, 0.0  ;;  %v646_v7 = vadd.f32 %v2898_v36, %v645_v47  ;;  %v1063_v44 = vadd.f32 %v1031_v29, %v931_v59  ;;  %v1326_v47 = vmul.f32 %v2920_v17, %v3081_v27 }
 0x1e0   : > { %v1062_v48 = vadd.f32 %v1030_v8, %v930_v52  ;;  %v3157_v59 = vmul.f32 %v2922_v18, %v3112_v14  ;;  %v1130_v52 = vmul.f32 %v2918_v15, %v3146_v45  ;;  %v1359_v8 = vadd.f32 %v1327_v19, %v1259_v57 }
 0x1e1   : > { %v773_v37 = vmin.f32 %v741_v49, 6.0  ;;  %v740_v2 = vmax.f32 %v646_v7, 0.0  ;;  %v1526_v58 = vmul.f32 %v2924_v20, %v3077_v0  ;;  %v1163_v49 = vadd.f32 %v1131_v54, %v1063_v44 }
 0x1e2   : > { %v3160_v6 = vld [vmem:[#allocation2 + $0xc9] sm:$0xff]  ;;  %v1261_v61 = vadd.f32 %v1229_v39, %v1161_v5  ;;  %v1260_v62 = vadd.f32 %v1228_v35, %v1160_v55  ;;  %v1358_v7 = vadd.f32 %v1326_v47, %v1258_v38  ;;  %v1162_v9 = vadd.f32 %v1130_v52, %v1062_v48 }
 0x1e3   : > { %862 = vst.msk [vmem:[#allocation2 + $0xe1] sm:$0xff] %vm788_vm2, %v773_v37  ;;  %v772_v29 = vmin.f32 %v740_v2, 6.0  ;;  %v1331_v0 = vmul.f32 %v2920_v17, %v3160_v6  ;;  %v1329_v44 = vmul.f32 %v2920_v17, %v3107_v12  ;;  %v1328_v39 = vmul.f32 %v2920_v17, %v3118_v16  ;;  %v1395_v54 = vld [vmem:[#allocation2 + $0xca] sm:$0xff] }
 0x1e4   : > { %v2358_v33 = vpop.f32.mrf.mxu0  ;;  %v1195_v1 = vld [vmem:[#allocation2 + $0xc8] sm:$0xff]  ;;  %v1194_v56 = vld [vmem:[#allocation2 + $0xc0] sm:$0xff]  ;;  %v1528_v5 = vmul.f32 %v2924_v20, %v895_v23  ;;  %v1429_v52 = vmul.f32 %v2922_v18, %v3142_v10  ;;  %v1459_v46 = vadd.f32 %v3123_v42, %v1359_v8 }
 0x1e5   : > { %861 = vst.msk [vmem:[#allocation2 + $0xd9] sm:$0xff] %vm788_vm2, %v772_v29  ;;  %v661_v37 = vadd.f32 %v2358_v33, %v2898_v36  ;;  %v1231_v2 = vmul.f32 %v2930_v30, %v1195_v1  ;;  %v1230_v15 = vmul.f32 %v2930_v30, %v1194_v56  ;;  %v1294_v57 = vld [vmem:[#allocation2 + $0xc1] sm:$0xff]  ;;  %v1361_v29 = vadd.f32 %v1329_v44, %v1261_v61 }
 0x1e6   : > { %v655_v19 = vpop.f32.mrf.mxu0  ;;  %v1330_v55 = vmul.f32 %v2920_v17, %v1294_v57  ;;  %v1360_v33 = vadd.f32 %v1328_v39, %v1260_v62  ;;  %v1394_v26 = vld [vmem:[#allocation2 + $0xc2] sm:$0xff]  ;;  %v1431_v61 = vmul.f32 %v2922_v18, %v1395_v54  ;;  %v1560_v62 = vadd.f32 %v1528_v5, %v1459_v46 }
 0x1e7   : > { %v743_v35 = vmax.f32 %v661_v37, 0.0  ;;  %v656_v38 = vadd.f32 %v2898_v36, %v655_v19  ;;  %v1263_v47 = vadd.f32 %v1231_v2, %v1163_v49  ;;  %v1262_v48 = vadd.f32 %v1230_v15, %v1162_v9 }
 0x1e8   : > { %v1530_v37 = vmul.f32 %v2924_v20, %v1195_v1  ;;  %v1428_v9 = vmul.f32 %v2922_v18, %v3146_v45  ;;  %v1529_v15 = vmul.f32 %v2924_v20, %v1194_v56  ;;  %v1558_v2 = vadd.f32 %v1526_v58, %v3127_v22 }
 0x1e9   : > { %v775_v30 = vmin.f32 %v743_v35, 6.0  ;;  %v742_v60 = vmax.f32 %v656_v38, 0.0  ;;  %v1363_v4 = vadd.f32 %v1331_v0, %v1263_v47  ;;  %v1362_v23 = vadd.f32 %v1330_v55, %v1262_v48 }
 0x1ea   : > { %v1430_v42 = vmul.f32 %v2922_v18, %v1394_v26  ;;  %v1461_v44 = vadd.f32 %v1429_v52, %v1361_v29  ;;  %v1460_v1 = vadd.f32 %v1428_v9, %v1360_v33  ;;  %v1527_v39 = vmul.f32 %v2924_v20, %v3116_v24  ;;  %v1596_v58 = vld [vmem:[#allocation2 + $0xe1] sm:$0xff] }
 0x1eb   : > { %864 = vst.msk [vmem:[#allocation2 + $0xf9] sm:$0xff] %vm788_vm2, %v775_v30  ;;  %v774_v49 = vmin.f32 %v742_v60, 6.0  ;;  %v1463_v60 = vadd.f32 %v1431_v61, %v1363_v4  ;;  %v1628_v47 = vmul.f32 %v2932_v31, %v3107_v12  ;;  %v1458_v52 = vadd.f32 %v3157_v59, %v1358_v7  ;;  %v1696_v12 = vld [vmem:[#allocation2 + $0xe2] sm:$0xff] }
 0x1ec   : > { %v2361_v19 = vpop.f32.mrf.mxu0  ;;  %v1496_v0 = vld [vmem:[#allocation2 + $0xe0] sm:$0xff]  ;;  %v1495_v8 = vld [vmem:[#allocation2 + $0xd8] sm:$0xff]  ;;  %v1462_v5 = vadd.f32 %v1430_v42, %v1362_v23  ;;  %v1562_v35 = vadd.f32 %v1530_v37, %v1461_v44  ;;  %v1561_v38 = vadd.f32 %v1529_v15, %v1460_v1  ;;  %v1630_v33 = vmul.f32 %v2932_v31, %v3160_v6 }
 0x1ed   : > { %863 = vst.msk [vmem:[#allocation2 + $0xf1] sm:$0xff] %vm788_vm2, %v774_v49  ;;  %v671_v30 = vadd.f32 %v2361_v19, %v2898_v36  ;;  %v1532_v56 = vmul.f32 %v2924_v20, %v1496_v0  ;;  %v1531_v46 = vmul.f32 %v2924_v20, %v1495_v8  ;;  %v1595_v29 = vld [vmem:[#allocation2 + $0xd9] sm:$0xff]  ;;  %v1629_v9 = vmul.f32 %v2932_v31, %v1294_v57 }
 0x1ee   : > { %v665_v22 = vpop.f32.mrf.mxu0  ;;  %v1660_v49 = vadd.f32 %v1628_v47, %v1560_v62  ;;  %v1632_v15 = vmul.f32 %v2932_v31, %v1596_v58  ;;  %v1559_v61 = vadd.f32 %v1527_v39, %v1458_v52  ;;  %v1631_v19 = vmul.f32 %v2932_v31, %v1595_v29  ;;  %v1695_v8 = vld [vmem:[#allocation2 + $0xda] sm:$0xff] }
 0x1ef   : > { %v745_v48 = vmax.f32 %v671_v30, 0.0  ;;  %v666_v24 = vadd.f32 %v2898_v36, %v665_v22  ;;  %v1564_v55 = vadd.f32 %v1532_v56, %v1463_v60  ;;  %v1563_v4 = vadd.f32 %v1531_v46, %v1462_v5  ;;  %v3228_v47 = vld [vmem:[%s3844_s4] ss:$0 sm:$0xff] }
 0x1f0   : > { %v1662_v0 = vadd.f32 %v1630_v33, %v1562_v35  ;;  %v1661_v42 = vadd.f32 %v1629_v9, %v1561_v38  ;;  %v1728_v59 = vmul.f32 %v2934_v32, %v3142_v10  ;;  %v1730_v57 = vmul.f32 %v2934_v32, %v1395_v54 }
 0x1f1   : > { %v777_v23 = vmin.f32 %v745_v48, 6.0  ;;  %v744_v37 = vmax.f32 %v666_v24, 0.0  ;;  %v1664_v6 = vadd.f32 %v1632_v15, %v1564_v55  ;;  %v1627_v62 = vmul.f32 %v2932_v31, %v3118_v16 }
 0x1f2   : > { %v1663_v1 = vadd.f32 %v1631_v19, %v1563_v4  ;;  %v1729_v39 = vmul.f32 %v2934_v32, %v1394_v26  ;;  %v1760_v30 = vadd.f32 %v1728_v59, %v1660_v49  ;;  %v1525_v60 = vmul.f32 %v2924_v20, %v3079_v25  ;;  %v1884_v25 = vld [vmem:[%s3845_s5] sm:$0xf] }
 0x1f3   : > { %866 = vst.msk [vmem:[#allocation2 + $0x111] sm:$0xff] %vm788_vm2, %v777_v23  ;;  %v776_v7 = vmin.f32 %v744_v37, 6.0  ;;  %v1732_v56 = vmul.f32 %v2934_v32, %v1696_v12  ;;  %v1659_v46 = vadd.f32 %v1627_v62, %v1559_v61  ;;  %v1456_v54 = vadd.f32 %v3091_v41, %v3096_v21  ;;  %2325 = vmatprep.mubr.msk.f32.mxu1 %vm788_vm2, %v1884_v25 }
 0x1f4   : > { %v2364_v44 = vpop.f32.mrf.mxu0  ;;  %v1731_v16 = vmul.f32 %v2934_v32, %v1695_v8  ;;  %v1762_v58 = vadd.f32 %v1730_v57, %v1662_v0  ;;  %v1761_v5 = vadd.f32 %v1729_v39, %v1661_v42  ;;  %v1658_v26 = vadd.f32 %v3139_v53, %v1558_v2  ;;  %v3932_v39 = vld [vmem:[#allocation30_spill] sm:$0xff] }
 0x1f5   : > { %865 = vst.msk [vmem:[#allocation2 + $0x109] sm:$0xff] %vm788_vm2, %v776_v7  ;;  %v681_v10 = vadd.f32 %v2364_v44, %v2898_v36  ;;  %v1764_v41 = vadd.f32 %v1732_v56, %v1664_v6  ;;  %v1727_v21 = vmul.f32 %v2934_v32, %v3146_v45  ;;  %v1799_v53 = vadd.f32 %v3228_v47, %v1760_v30 }
 0x1f6   : > { %v675_v22 = vpop.f32.mrf.mxu0  ;;  %v1763_v48 = vadd.f32 %v1731_v16, %v1663_v1  ;;  %v1726_v2 = vmul.f32 %v2934_v32, %v3087_v40  ;;  %v1557_v24 = vadd.f32 %v1525_v60, %v1456_v54  ;;  %v1354_v4 = vadd.f32 %v3057_v34, %v3054_v43 }
 0x1f7   : > { %v747_v35 = vmax.f32 %v681_v10, 0.0  ;;  %v676_v38 = vadd.f32 %v2898_v36, %v675_v22  ;;  %v1759_v52 = vadd.f32 %v1727_v21, %v1659_v46  ;;  %v1801_v33 = vadd.f32 %v3228_v47, %v1762_v58 }
 0x1f8   : > { %v1758_v9 = vadd.f32 %v1726_v2, %v1658_v26  ;;  %v1625_v45 = vmul.f32 %v2932_v31, %v3081_v27  ;;  %v1656_v49 = vadd.f32 %v3094_v13, %v3104_v3  ;;  %v1803_v40 = vadd.f32 %v3228_v47, %v1764_v41 }
 0x1f9   : > { %v779_v55 = vmin.f32 %v747_v35, 6.0  ;;  %v746_v29 = vmax.f32 %v676_v38, 0.0  ;;  %v1800_v37 = vadd.f32 %v3228_v47, %v1761_v5  ;;  %v3248_v15 = vadd.f32 %v3066_v28, %v3031_v63  ;;  %v3938_v5 = vld [vmem:[#allocation15_spill] sm:$0xff] }
 0x1fa   : > { %v1802_v34 = vadd.f32 %v3228_v47, %v1763_v48  ;;  %v1831_v61 = vmax.f32 %v1799_v53, 0.0  ;;  %v1657_v12 = vadd.f32 %v1625_v45, %v1557_v24  ;;  %v1724_v27 = vmul.f32 %v2934_v32, %v3048_v11  ;;  %v3287_v21 = vld [vmem:[#allocation2 + $0x112] sm:$0xff]  ;;  %v3941_v48 = vld [vmem:[#allocation34_spill] sm:$0xff] }
 0x1fb   : > { %868 = vst.msk [vmem:[#allocation2 + $0x129] sm:$0xff] %vm788_vm2, %v779_v55  ;;  %v778_v23 = vmin.f32 %v746_v29, 6.0  ;;  %3928 = vst [vmem:[#allocation38_spill] sm:$0xff] %v3248_v15  ;;  %v1798_v3 = vadd.f32 %v3228_v47, %v1759_v52  ;;  %v1454_v19 = vadd.f32 %v3062_v51, %v1354_v4  ;;  %v1523_v63 = vmul.f32 %v2924_v20, %v3024_v50  ;;  %v3931_v50 = vld [vmem:[#allocation31_spill] sm:$0xff]  ;;  %v3943_v55 = vld [vmem:[#allocation16_spill] sm:$0xff] }
 0x1fc   : > { %v2367_v43 = vpop.f32.mrf.mxu0  ;;  %v1833_v0 = vmax.f32 %v1801_v33, 0.0  ;;  %v1797_v42 = vadd.f32 %v3228_v47, %v1758_v9  ;;  %v1725_v59 = vmul.f32 %v2934_v32, %v3112_v14  ;;  %v1756_v7 = vadd.f32 %v1724_v27, %v1656_v49  ;;  %v3263_v62 = vld [vmem:[#allocation2 + $0x110] sm:$0xff]  ;;  %v3273_v46 = vld [vmem:[#allocation2 + $0x108] sm:$0xff]  ;;  %v3300_v33 = vld [vmem:[#allocation2 + $0xf8] sm:$0xff] }
 0x1fd   : > { %867 = vst.msk [vmem:[#allocation2 + $0x121] sm:$0xff] %vm788_vm2, %v778_v23  ;;  %v691_v13 = vadd.f32 %v2367_v43, %v2898_v36  ;;  %v1835_v8 = vmax.f32 %v1803_v40, 0.0  ;;  %v1832_v57 = vmax.f32 %v1800_v37, 0.0  ;;  %3929 = vst [vmem:[#allocation39_spill] sm:$0xff] %v3263_v62  ;;  %v1834_v44 = vmax.f32 %v1802_v34, 0.0  ;;  %v3271_v14 = vld [vmem:[#allocation2 + $0x111] sm:$0xff] }
 0x1fe   : > { %v685_v28 = vpop.f32.mrf.mxu0  ;;  %v3265_v51 = vmin.f32 %v1831_v61, 6.0  ;;  %v1757_v1 = vadd.f32 %v1725_v59, %v1657_v12  ;;  %v3269_v30 = vadd.f32 %v3932_v39, %v3931_v50  ;;  %v1830_v56 = vmax.f32 %v1798_v3, 0.0  ;;  %3934 = vst [vmem:[#allocation30_spill] sm:$0xff] %v3271_v14  ;;  %3935 = vst [vmem:[#allocation41_spill] sm:$0xff] %v3273_v46  ;;  %v3275_v54 = vld [vmem:[#allocation2 + $0x109] sm:$0xff]  ;;  %v3310_v37 = vld [vmem:[#allocation2 + $0xf9] sm:$0xff] }
 0x1ff   : > { %v749_v11 = vmax.f32 %v691_v13, 0.0  ;;  %v686_v6 = vadd.f32 %v2898_v36, %v685_v28  ;;  %3936 = vst [vmem:[#allocation42_spill] sm:$0xff] %v3275_v54  ;;  %v1555_v22 = vadd.f32 %v1523_v63, %v1454_v19  ;;  %v3277_v16 = vmin.f32 %v1833_v0, 6.0  ;;  %3944 = vst [vmem:[#allocation46_spill] sm:$0xff] %v3300_v33  ;;  %v3308_v23 = vld [vmem:[#allocation2 + $0x10a] sm:$0xff]  ;;  %v3950_v27 = vld [vmem:[#allocation17_spill] sm:$0xff] }
 0x200   : > { %3930 = vst [vmem:[#allocation40_spill] sm:$0xff] %v3265_v51  ;;  %3933 = vst [vmem:[#allocation31_spill] sm:$0xff] %v3269_v30  ;;  %v1829_v58 = vmax.f32 %v1797_v42, 0.0  ;;  %v939_v26 = vmul.f32 %v3938_v5, %v3263_v62  ;;  %v1795_v25 = vadd.f32 %v3228_v47, %v1756_v7  ;;  %v3283_v38 = vmin.f32 %v1835_v8, 6.0  ;;  %v3953_v42 = vld [vmem:[#allocation37_spill] sm:$0xff]  ;;  %v3955_v50 = vld [vmem:[#allocation18_spill] sm:$0xff] }
 0x201   : > { %v781_v60 = vmin.f32 %v749_v11, 6.0  ;;  %v748_v10 = vmax.f32 %v686_v6, 0.0  ;;  %3937 = vst [vmem:[#allocation43_spill] sm:$0xff] %v3277_v16  ;;  %v3285_v41 = vmin.f32 %v1832_v57, 6.0  ;;  %v1623_v53 = vmul.f32 %v2932_v31, %v3941_v48  ;;  %3947 = vst [vmem:[#allocation49_spill] sm:$0xff] %v3308_v23 }
 0x202   : > { %3939 = vst [vmem:[#allocation44_spill] sm:$0xff] %v3283_v38  ;;  %v3292_v24 = vadd.f32 %v3228_v47, %v1757_v1  ;;  %v1039_v29 = vmul.f32 %v3943_v55, %v3271_v14  ;;  %v938_v52 = vmul.f32 %v3938_v5, %v3273_v46  ;;  %v1038_v4 = vmul.f32 %v3943_v55, %v3275_v54  ;;  %v3332_v1 = vld [vmem:[#allocation2 + $0x129] sm:$0xff] }
 0x203   : > { %870 = vst.msk [vmem:[#allocation2 + $0x141] sm:$0xff] %vm788_vm2, %v781_v60  ;;  %v780_v35 = vmin.f32 %v748_v10, 6.0  ;;  %3940 = vst [vmem:[#allocation45_spill] sm:$0xff] %v3285_v41  ;;  %v3304_v45 = vmin.f32 %v1834_v44, 6.0  ;;  %v3306_v49 = vmin.f32 %v1830_v56, 6.0  ;;  %v1655_v40 = vadd.f32 %v1623_v53, %v1555_v22  ;;  %v3336_v10 = vld [vmem:[#allocation2 + $0xfa] sm:$0xff] }
 0x204   : > { %v2370_v2 = vpop.f32.mrf.mxu0  ;;  %3942 = vst [vmem:[#allocation34_spill] sm:$0xff] %v3292_v24  ;;  %3948 = vst [vmem:[#allocation50_spill] sm:$0xff] %v3310_v37  ;;  %v3312_v34 = vld [vmem:[#allocation2 + $0x128] sm:$0xff]  ;;  %v3314_v61 = vmin.f32 %v1829_v58, 6.0  ;;  %v1071_v12 = vadd.f32 %v1039_v29, %v939_v26  ;;  %v1139_v13 = vmul.f32 %v3950_v27, %v3287_v21  ;;  %v1827_v3 = vmax.f32 %v1795_v25, 0.0  ;;  %v3319_v28 = vld [vmem:[#allocation2 + $0x120] sm:$0xff] }
 0x205   : > { %869 = vst.msk [vmem:[#allocation2 + $0x139] sm:$0xff] %vm788_vm2, %v780_v35  ;;  %v701_v9 = vadd.f32 %v2370_v2, %v2898_v36  ;;  %3945 = vst [vmem:[#allocation47_spill] sm:$0xff] %v3304_v45  ;;  %v3321_v0 = vld [vmem:[#allocation2 + $0x121] sm:$0xff]  ;;  %v1723_v59 = vmul.f32 %v2934_v32, %v3953_v42  ;;  %v937_v7 = vmul.f32 %v3938_v5, %v3300_v33  ;;  %v3340_v22 = vld [vmem:[#allocation2 + $0x12a] sm:$0xff] }
 0x206   : > { %3946 = vst [vmem:[#allocation48_spill] sm:$0xff] %v3306_v49  ;;  %v695_v43 = vpop.f32.mrf.mxu0  ;;  %3949 = vst [vmem:[#allocation51_spill] sm:$0xff] %v3314_v61  ;;  %v1070_v6 = vadd.f32 %v1038_v4, %v938_v52  ;;  %v1138_v8 = vmul.f32 %v3950_v27, %v3308_v23  ;;  %v1037_v57 = vmul.f32 %v3943_v55, %v3310_v37  ;;  %v3349_v53 = vmin.f32 %v1827_v3, 6.0 }
 0x207   : > { %v751_v19 = vmax.f32 %v701_v9, 0.0  ;;  %v696_v63 = vadd.f32 %v2898_v36, %v695_v43  ;;  %3951 = vst [vmem:[#allocation52_spill] sm:$0xff] %v3319_v28  ;;  %3952 = vst [vmem:[#allocation53_spill] sm:$0xff] %v3321_v0  ;;  %v1239_v39 = vmul.f32 %v3955_v50, %v3312_v34  ;;  %v1755_v60 = vadd.f32 %v1723_v59, %v1655_v40  ;;  %v2451_v43 = vld [vmem:[#allocation7] ss:$0 sm:$0xff] }
 0x208   : > { %3954 = vst [vmem:[#allocation37_spill] sm:$0xff] %v3332_v1  ;;  %3956 = vst [vmem:[#allocation54_spill] sm:$0xff] %v3336_v10  ;;  %v941_v56 = vmul.f32 %v3938_v5, %v3312_v34  ;;  %v940_v58 = vmul.f32 %v3938_v5, %v3319_v28  ;;  %v1040_v26 = vmul.f32 %v3943_v55, %v3321_v0 }
 0x209   : > { %v783_v36 = vmin.f32 %v751_v19, 6.0  ;;  %v750_v44 = vmax.f32 %v696_v63, 0.0  ;;  %3957 = vst [vmem:[#allocation55_spill] sm:$0xff] %v3340_v22  ;;  %v1238_v25 = vmul.f32 %v3955_v50, %v3319_v28  ;;  %v1171_v48 = vadd.f32 %v1139_v13, %v1071_v12  ;;  %3958 = vst [vmem:[#allocation56_spill] sm:$0xff] %v3349_v53  ;;  %v3360_v13 = vld [vmem:[#allocation2 + $0x122] sm:$0xff] }
 0x20a   : > { %v1069_v2 = vadd.f32 %v1037_v57, %v937_v7  ;;  %v1041_v52 = vmul.f32 %v3943_v55, %v3332_v1  ;;  %v1170_v4 = vadd.f32 %v1138_v8, %v1070_v6  ;;  %v1137_v9 = vmul.f32 %v3950_v27, %v3336_v10  ;;  %3959 = vst [vmem:[#allocation57_spill] sm:$0xff] %v3360_v13 }
 0x20b   : > { %872 = vst.msk [vmem:[#allocation2 + $0x159] sm:$0xff] %vm788_vm2, %v783_v36  ;;  %v782_v35 = vmin.f32 %v750_v44, 6.0  ;;  %v1237_v40 = vmul.f32 %v3955_v50, %v3263_v62  ;;  %v1141_v12 = vmul.f32 %v3950_v27, %v3340_v22  ;;  %v1271_v3 = vadd.f32 %v1239_v39, %v1171_v48 }
 0x20c   : > { %v2373_v29 = vpop.f32.mrf.mxu0  ;;  %v3363_v63 = vadd.f32 %v3228_v47, %v1755_v60  ;;  %v1073_v59 = vadd.f32 %v1041_v52, %v941_v56  ;;  %v1072_v7 = vadd.f32 %v1040_v26, %v940_v58  ;;  %v1339_v6 = vmul.f32 %v2920_v17, %v3332_v1  ;;  %v3367_v44 = vld [vmem:[#allocation2 + $0x140] sm:$0xff]  ;;  %v3371_v11 = vld [vmem:[#allocation2 + $0x138] sm:$0xff] }
 0x20d   : > { %871 = vst.msk [vmem:[#allocation2 + $0x151] sm:$0xff] %vm788_vm2, %v782_v35  ;;  %v711_v19 = vadd.f32 %v2451_v43, %v2373_v29  ;;  %v1270_v8 = vadd.f32 %v1238_v25, %v1170_v4  ;;  %v1439_v35 = vmul.f32 %v2922_v18, %v3340_v22  ;;  %v1169_v29 = vadd.f32 %v1137_v9, %v1069_v2  ;;  %v3373_v39 = vld [vmem:[#allocation2 + $0x139] sm:$0xff]  ;;  %v1007_v2 = vld [vmem:[#allocation2 + $0x141] sm:$0xff] }
 0x20e   : > { %3960 = vst [vmem:[#allocation58_spill] sm:$0xff] %v3363_v63  ;;  %v705_v42 = vpop.f32.mrf.mxu0  ;;  %v1140_v60 = vmul.f32 %v3950_v27, %v3360_v13  ;;  %v1338_v56 = vmul.f32 %v2920_v17, %v3321_v0  ;;  %v3381_v58 = vmul.f32 %v2922_v18, %v3360_v13  ;;  %v3385_v26 = vmul.f32 %v2920_v17, %v3271_v14  ;;  %v3387_v52 = vld [vmem:[#allocation2 + $0x142] sm:$0xff] }
 0x20f   : > { %v753_v57 = vmax.f32 %v711_v19, 0.0  ;;  %v706_v36 = vadd.f32 %v2451_v43, %v705_v42  ;;  %v1371_v4 = vadd.f32 %v1339_v6, %v1271_v3  ;;  %v943_v19 = vmul.f32 %v3938_v5, %v3367_v44 }
 0x210   : > { %v1173_v42 = vadd.f32 %v1141_v12, %v1073_v59  ;;  %v1172_v53 = vadd.f32 %v1140_v60, %v1072_v7  ;;  %v3392_v61 = vadd.f32 %v1338_v56, %v1270_v8  ;;  %v1042_v3 = vmul.f32 %v3943_v55, %v3373_v39 }
 0x211   : > { %v785_v25 = vmin.f32 %v753_v57, 6.0  ;;  %v752_v48 = vmax.f32 %v706_v36, 0.0  ;;  %v942_v57 = vmul.f32 %v3938_v5, %v3371_v11  ;;  %v1241_v6 = vmul.f32 %v3955_v50, %v3367_v44 }
 0x212   : > { %v3395_v14 = vld [vmem:[#allocation2 + $0x159] sm:$0xff]  ;;  %v1043_v12 = vmul.f32 %v3943_v55, %v1007_v2  ;;  %v1143_v59 = vmul.f32 %v3950_v27, %v3387_v52  ;;  %v1341_v7 = vmul.f32 %v2920_v17, %v1007_v2  ;;  %v3409_v8 = vadd.f32 %v1237_v40, %v1169_v29 }
 0x213   : > { %874 = vst.msk [vmem:[#allocation2 + $0x171] sm:$0xff] %vm788_vm2, %v785_v25  ;;  %v784_v49 = vmin.f32 %v752_v48, 6.0  ;;  %v1441_v13 = vmul.f32 %v2922_v18, %v3387_v52  ;;  %v1471_v62 = vadd.f32 %v1439_v35, %v1371_v4  ;;  %v1045_v51 = vmul.f32 %v3943_v55, %v3395_v14  ;;  %v3422_v29 = vld [vmem:[#allocation2 + $0x13a] sm:$0xff] }
 0x214   : > { %v2376_v36 = vpop.f32.mrf.mxu0  ;;  %v3403_v9 = vld [vmem:[#allocation2 + $0x158] sm:$0xff]  ;;  %v3414_v25 = vld [vmem:[#allocation2 + $0x150] sm:$0xff]  ;;  %v1075_v40 = vadd.f32 %v1043_v12, %v943_v19  ;;  %3961 = vst [vmem:[#allocation59_spill] sm:$0xff] %v3422_v29  ;;  %v1074_v30 = vadd.f32 %v1042_v3, %v942_v57  ;;  %v1273_v28 = vadd.f32 %v1241_v6, %v1173_v42  ;;  %v3445_v57 = vmul.f32 %v2922_v18, %v3422_v29 }
 0x215   : > { %873 = vst.msk [vmem:[#allocation2 + $0x169] sm:$0xff] %vm788_vm2, %v784_v49  ;;  %v721_v60 = vadd.f32 %v2451_v43, %v2376_v36  ;;  %v945_v56 = vmul.f32 %v3938_v5, %v3403_v9  ;;  %v3416_v48 = vld [vmem:[#allocation2 + $0x151] sm:$0xff]  ;;  %v1240_v49 = vmul.f32 %v3955_v50, %v3371_v11  ;;  %v3427_v36 = vmul.f32 %v2932_v31, %v1007_v2  ;;  %v3429_v41 = vld [vmem:[#allocation2 + $0x15a] sm:$0xff] }
 0x216   : > { %v715_v10 = vpop.f32.mrf.mxu0  ;;  %v944_v4 = vmul.f32 %v3938_v5, %v3414_v25  ;;  %v1044_v19 = vmul.f32 %v3943_v55, %v3416_v48  ;;  %v1243_v12 = vmul.f32 %v3955_v50, %v3403_v9  ;;  %v1142_v2 = vmul.f32 %v3950_v27, %v3422_v29 }
 0x217   : > { %v755_v0 = vmax.f32 %v721_v60, 0.0  ;;  %v716_v37 = vadd.f32 %v2451_v43, %v715_v10  ;;  %v1077_v35 = vadd.f32 %v1045_v51, %v945_v56  ;;  %v1340_v10 = vmul.f32 %v2920_v17, %v3373_v39 }
 0x218   : > { %v1145_v51 = vmul.f32 %v3950_v27, %v3429_v41  ;;  %v1175_v43 = vadd.f32 %v1143_v59, %v1075_v40  ;;  %v1272_v42 = vadd.f32 %v1240_v49, %v1172_v53  ;;  %v1174_v6 = vadd.f32 %v1142_v2, %v1074_v30 }
 0x219   : > { %v787_v23 = vmin.f32 %v755_v0, 6.0  ;;  %v754_v16 = vmax.f32 %v716_v37, 0.0  ;;  %v3450_v37 = vld [vmem:[#allocation2 + $0x152] sm:$0xff]  ;;  %v1242_v60 = vmul.f32 %v3955_v50, %v3414_v25  ;;  %v1540_v56 = vmul.f32 %v2924_v20, %v3367_v44 }
 0x21a   : > { %v3448_v0 = vld [vmem:[#allocation2 + $0x171] sm:$0xff]  ;;  %v1177_v49 = vadd.f32 %v1145_v51, %v1077_v35  ;;  %v1076_v22 = vadd.f32 %v1044_v19, %v944_v4  ;;  %v1275_v33 = vadd.f32 %v1243_v12, %v1175_v43  ;;  %v1144_v35 = vmul.f32 %v3950_v27, %v3450_v37 }
 0x21b   : > { %876 = vst.msk [vmem:[#allocation2 + $0x189] sm:$0xff] %vm788_vm2, %v787_v23  ;;  %v786_v3 = vmin.f32 %v754_v16, 6.0  ;;  %v1373_v23 = vadd.f32 %v1341_v7, %v1273_v28  ;;  %v1047_v44 = vmul.f32 %v3943_v55, %v3448_v0  ;;  %v1343_v28 = vmul.f32 %v2920_v17, %v3395_v14  ;;  %v3471_v7 = vld [vmem:[#allocation2 + $0x172] sm:$0xff] }
 0x21c   : > { %v911_v59 = vld [vmem:[#allocation2 + $0x170] sm:$0xff]  ;;  %v910_v53 = vld [vmem:[#allocation2 + $0x168] sm:$0xff]  ;;  %v1274_v12 = vadd.f32 %v1242_v60, %v1174_v6  ;;  %v3473_v51 = vadd.f32 %v1340_v10, %v1272_v42  ;;  %v3475_v43 = vadd.f32 %v1540_v56, %v1471_v62  ;;  %v1176_v45 = vadd.f32 %v1144_v35, %v1076_v22 }
 0x21d   : > { %v3456_v40 = vld [vmem:[#allocation2 + $0x169] sm:$0xff]  ;;  %875 = vst.msk [vmem:[#allocation2 + $0x181] sm:$0xff] %vm788_vm2, %v786_v3  ;;  %v947_v16 = vmul.f32 %v3938_v5, %v911_v59  ;;  %v946_v30 = vmul.f32 %v3938_v5, %v910_v53  ;;  %v1245_v54 = vmul.f32 %v3955_v50, %v911_v59  ;;  %v1244_v4 = vmul.f32 %v3955_v50, %v910_v53 }
 0x21e   : > { %v1046_v2 = vmul.f32 %v3943_v55, %v3456_v40  ;;  %v3477_v15 = vld [vmem:[#allocation2 + $0x16a] sm:$0xff]  ;;  %v1375_v1 = vadd.f32 %v1343_v28, %v1275_v33  ;;  %v1443_v63 = vmul.f32 %v2922_v18, %v3429_v41  ;;  %v1345_v24 = vmul.f32 %v2920_v17, %v3448_v0 }
 0x21f   : > { %v1277_v19 = vadd.f32 %v1245_v54, %v1177_v49  ;;  %v1079_v3 = vadd.f32 %v1047_v44, %v947_v16  ;;  %v1342_v54 = vmul.f32 %v2920_v17, %v3416_v48  ;;  %v1473_v6 = vadd.f32 %v1441_v13, %v1373_v23 }
 0x220   : > { %v1078_v46 = vadd.f32 %v1046_v2, %v946_v30  ;;  %v1147_v62 = vmul.f32 %v3950_v27, %v3471_v7  ;;  %v1276_v10 = vadd.f32 %v1244_v4, %v1176_v45  ;;  %v1442_v42 = vmul.f32 %v2922_v18, %v3450_v37 }
 0x221   : > { %v1542_v33 = vmul.f32 %v2924_v20, %v3403_v9  ;;  %v1146_v60 = vmul.f32 %v3950_v27, %v3477_v15  ;;  %v1377_v56 = vadd.f32 %v1345_v24, %v1277_v19  ;;  %v1445_v49 = vmul.f32 %v2922_v18, %v3471_v7 }
 0x222   : > { %v1311_v22 = vld [vmem:[#allocation2 + $0x189] sm:$0xff]  ;;  %v1374_v16 = vadd.f32 %v1342_v54, %v1274_v12  ;;  %v1179_v13 = vadd.f32 %v1147_v62, %v1079_v3  ;;  %v1344_v45 = vmul.f32 %v2920_v17, %v3456_v40  ;;  %v1475_v44 = vadd.f32 %v1443_v63, %v1375_v1 }
 0x223   : > { %v1544_v35 = vmul.f32 %v2924_v20, %v911_v59  ;;  %v1411_v4 = vld [vmem:[#allocation2 + $0x18a] sm:$0xff]  ;;  %v1178_v28 = vadd.f32 %v1146_v60, %v1078_v46  ;;  %v1347_v12 = vmul.f32 %v2920_v17, %v1311_v22  ;;  %v1444_v62 = vmul.f32 %v2922_v18, %v3477_v15 }
 0x224   : > { %v1211_v23 = vld [vmem:[#allocation2 + $0x188] sm:$0xff]  ;;  %v1210_v30 = vld [vmem:[#allocation2 + $0x180] sm:$0xff]  ;;  %v1376_v54 = vadd.f32 %v1344_v45, %v1276_v10  ;;  %v1543_v27 = vmul.f32 %v2924_v20, %v910_v53  ;;  %v1477_v38 = vadd.f32 %v1445_v49, %v1377_v56  ;;  %v1447_v46 = vmul.f32 %v2922_v18, %v1411_v4 }
 0x225   : > { %v1310_v2 = vld [vmem:[#allocation2 + $0x181] sm:$0xff]  ;;  %v1247_v9 = vmul.f32 %v3955_v50, %v1211_v23  ;;  %v1246_v24 = vmul.f32 %v3955_v50, %v1210_v30  ;;  %v1546_v19 = vmul.f32 %v2924_v20, %v1211_v23  ;;  %v1545_v60 = vmul.f32 %v2924_v20, %v1210_v30 }
 0x226   : > { %v1410_v3 = vld [vmem:[#allocation2 + $0x182] sm:$0xff]  ;;  %v1346_v59 = vmul.f32 %v2920_v17, %v1310_v2  ;;  %v1576_v50 = vadd.f32 %v1544_v35, %v1475_v44  ;;  %v1474_v23 = vadd.f32 %v1442_v42, %v1374_v16  ;;  %v1476_v29 = vadd.f32 %v1444_v62, %v1376_v54  ;;  %v3967_v62 = vld [vmem:[#allocation24_spill] sm:$0xff] }
 0x227   : > { %v1279_v1 = vadd.f32 %v1247_v9, %v1179_v13  ;;  %v1278_v63 = vadd.f32 %v1246_v24, %v1178_v28  ;;  %v1446_v10 = vmul.f32 %v2922_v18, %v1410_v3  ;;  %v1578_v45 = vadd.f32 %v1546_v19, %v1477_v38  ;;  %v3962_v35 = vld [vmem:[#allocation19_spill] sm:$0xff] }
 0x228   : > { %v1644_v53 = vmul.f32 %v2932_v31, %v3448_v0  ;;  %v1575_v13 = vadd.f32 %v1543_v27, %v1474_v23  ;;  %v1470_v9 = vadd.f32 %v3381_v58, %v3392_v61  ;;  %v1646_v28 = vmul.f32 %v2932_v31, %v1311_v22  ;;  %v3963_v0 = vld [vmem:[#allocation21_spill] sm:$0xff] }
 0x229   : > { %v1379_v55 = vadd.f32 %v1347_v12, %v1279_v1  ;;  %v1378_v5 = vadd.f32 %v1346_v59, %v1278_v63  ;;  %v1574_v30 = vadd.f32 %v1542_v33, %v1473_v6  ;;  %v1577_v44 = vadd.f32 %v1545_v60, %v1476_v29  ;;  %v3964_v29 = vld [vmem:[#allocation20_spill] sm:$0xff] }
 0x22a   : > { %v1676_v42 = vadd.f32 %v1644_v53, %v1576_v50  ;;  %v1643_v16 = vmul.f32 %v2932_v31, %v3456_v40  ;;  %v1642_v38 = vmul.f32 %v2932_v31, %v3395_v14  ;;  %v1678_v19 = vadd.f32 %v1646_v28, %v1578_v45  ;;  %v3965_v14 = vld [vmem:[#allocation23_spill] sm:$0xff]  ;;  %v3553_v28 = vld [vmem:[#allocation2 + $0xf0] sm:$0xff] }
 0x22b   : > { %v1479_v56 = vadd.f32 %v1447_v46, %v1379_v55  ;;  %v1478_v49 = vadd.f32 %v1446_v10, %v1378_v5  ;;  %v1472_v55 = vadd.f32 %v3445_v57, %v3473_v51  ;;  %v1645_v5 = vmul.f32 %v2932_v31, %v1310_v2 }
 0x22c   : > { %v1744_v61 = vmul.f32 %v2934_v32, %v3471_v7  ;;  %v1675_v50 = vadd.f32 %v1643_v16, %v1575_v13  ;;  %v1541_v58 = vmul.f32 %v2924_v20, %v3414_v25  ;;  %v1746_v33 = vmul.f32 %v2934_v32, %v1411_v4  ;;  %v3966_v7 = vld [vmem:[#allocation22_spill] sm:$0xff] }
 0x22d   : > { %v1580_v24 = vadd.f32 %v3962_v35, %v1479_v56  ;;  %v1579_v27 = vadd.f32 %v3963_v0, %v1478_v49  ;;  %v1674_v22 = vadd.f32 %v1642_v38, %v1574_v30  ;;  %v1677_v12 = vadd.f32 %v1645_v5, %v1577_v44 }
 0x22e   : > { %v1776_v54 = vadd.f32 %v1744_v61, %v1676_v42  ;;  %v1743_v57 = vmul.f32 %v2934_v32, %v3477_v15  ;;  %v1539_v51 = vmul.f32 %v2924_v20, %v3371_v11  ;;  %v1778_v25 = vadd.f32 %v1746_v33, %v1678_v19  ;;  %v3560_v42 = vld [vmem:[#allocation2 + $0xf1] sm:$0xff] }
 0x22f   : > { %v1680_v40 = vadd.f32 %v3964_v29, %v1580_v24  ;;  %v1679_v6 = vadd.f32 %v3965_v14, %v1579_v27  ;;  %v1742_v63 = vmul.f32 %v2934_v32, %v3429_v41  ;;  %v1745_v59 = vmul.f32 %v2934_v32, %v1410_v3  ;;  %v3968_v24 = vld [vmem:[#allocation59_spill] sm:$0xff]  ;;  %v3576_v27 = vld [vmem:[#allocation2 + $0xf2] sm:$0xff] }
 0x230   : > { %v1775_v4 = vadd.f32 %v1743_v57, %v1675_v50  ;;  %v1573_v46 = vadd.f32 %v1541_v58, %v1472_v55  ;;  %v1571_v60 = vadd.f32 %v1539_v51, %v1470_v9  ;;  %v1740_v11 = vmul.f32 %v2934_v32, %v3387_v52  ;;  %v3971_v50 = vld [vmem:[#allocation44_spill] sm:$0xff]  ;;  %v3972_v58 = vld [vmem:[#allocation34_spill] sm:$0xff]  ;;  %v3975_v57 = vld [vmem:[#allocation41_spill] sm:$0xff] }
 0x231   : > { %v1780_v2 = vadd.f32 %v3966_v7, %v1680_v40  ;;  %v1779_v1 = vadd.f32 %v3967_v62, %v1679_v6  ;;  %v1774_v10 = vadd.f32 %v1742_v63, %v1674_v22  ;;  %v1777_v45 = vadd.f32 %v1745_v59, %v1677_v12  ;;  %v3974_v12 = vld [vmem:[#allocation17_spill] sm:$0xff]  ;;  %v3976_v51 = vld [vmem:[#allocation18_spill] sm:$0xff] }
 0x232   : > { %v3544_v53 = vadd.f32 %v3228_v47, %v1776_v54  ;;  %v1641_v41 = vmul.f32 %v2932_v31, %v3416_v48  ;;  %v1639_v3 = vmul.f32 %v2932_v31, %v3373_v39  ;;  %v1817_v56 = vadd.f32 %v3228_v47, %v1778_v25  ;;  %v3594_v62 = vld [vmem:[#allocation2 + $0xe1] sm:$0xff] }
 0x233   : > { %v1819_v23 = vadd.f32 %v3228_v47, %v1780_v2  ;;  %v1818_v15 = vadd.f32 %v3228_v47, %v1779_v1  ;;  %v1369_v49 = vadd.f32 %v3385_v26, %v3409_v8  ;;  %v3556_v52 = vadd.f32 %v3228_v47, %v1775_v4  ;;  %v3592_v2 = vld [vmem:[#allocation2 + $0xe0] sm:$0xff] }
 0x234   : > { %v1673_v30 = vadd.f32 %v1641_v41, %v1573_v46  ;;  %v1672_v44 = vadd.f32 %v3427_v36, %v3475_v43  ;;  %v1671_v48 = vadd.f32 %v1639_v3, %v1571_v60  ;;  %v3563_v16 = vadd.f32 %v3228_v47, %v1774_v10  ;;  %v3969_v43 = vld [vmem:[#allocation15_spill] sm:$0xff]  ;;  %v3977_v59 = vld [vmem:[#allocation58_spill] sm:$0xff] }
 0x235   : > { %v1851_v13 = vmax.f32 %v1819_v23, 0.0  ;;  %v1850_v9 = vmax.f32 %v1818_v15, 0.0  ;;  %v1437_v38 = vmul.f32 %v2922_v18, %v3287_v21  ;;  %v1538_v26 = vmul.f32 %v2924_v20, %v3312_v34  ;;  %v3970_v34 = vld [vmem:[#allocation16_spill] sm:$0xff]  ;;  %v3979_v15 = vld [vmem:[#allocation37_spill] sm:$0xff]  ;;  %v3980_v41 = vld [vmem:[#allocation47_spill] sm:$0xff] }
 0x236   : > { %v1816_v8 = vadd.f32 %v3228_v47, %v1777_v45  ;;  %v1741_v35 = vmul.f32 %v2934_v32, %v3450_v37  ;;  %v1739_v36 = vmul.f32 %v2934_v32, %v3968_v24  ;;  %v936_v0 = vmul.f32 %v3969_v43, %v3553_v28  ;;  %v3605_v45 = vld [vmem:[#allocation2 + $0xe2] sm:$0xff]  ;;  %v3625_v24 = vld [vmem:[#allocation2 + $0xd8] sm:$0xff] }
 0x237   : > { %v1883_v39 = vmin.f32 %v1851_v13, 6.0  ;;  %v1882_v19 = vmin.f32 %v1850_v9, 6.0  ;;  %v1849_v55 = vmax.f32 %v1817_v56, 0.0  ;;  %v1469_v5 = vadd.f32 %v1437_v38, %v1369_v49 }
 0x238   : > { %v1036_v61 = vmul.f32 %v3970_v34, %v3560_v42  ;;  %v1773_v37 = vadd.f32 %v1741_v35, %v1673_v30  ;;  %v3973_v29 = vmax.f32 %v3972_v58, 0.0  ;;  %v1772_v14 = vadd.f32 %v1740_v11, %v1672_v44  ;;  %v3982_v30 = vld [vmem:[#allocation35_spill] sm:$0xff] }
 0x239   : > { %2293 = vmatprep.subr.msk.mxu1 %vm788_vm2, %v1883_v39  ;;  %v1771_v6 = vadd.f32 %v1739_v36, %v1671_v48  ;;  %v1570_v33 = vadd.f32 %v1538_v26, %v1469_v5  ;;  %v1136_v54 = vmul.f32 %v3974_v12, %v3576_v27  ;;  %v1236_v7 = vmul.f32 %v3976_v51, %v3975_v57  ;;  %v3983_v39 = vld [vmem:[#allocation42_spill] sm:$0xff] }
 0x23a   : > { %2294 = vmatpush3.xpose.msk.msra.mxu1 %vm788_vm2, %v3971_v50  ;;  %v3585_v40 = vmin.f32 %v3973_v29, 6.0  ;;  %v1068_v22 = vadd.f32 %v1036_v61, %v936_v0  ;;  %v1847_v1 = vmax.f32 %v3544_v53, 0.0  ;;  %v1846_v25 = vmax.f32 %v3556_v52, 0.0  ;;  %v3981_v52 = vld [vmem:[#allocation38_spill] sm:$0xff] }
 0x23b   : > { %2295 = vmatprep.subr.msk.mxu1 %vm788_vm2, %v1882_v19  ;;  %v1845_v63 = vmax.f32 %v3563_v16, 0.0  ;;  %v3978_v4 = vmax.f32 %v3977_v59, 0.0  ;;  %v1881_v60 = vmin.f32 %v1849_v55, 6.0  ;;  %v1848_v23 = vmax.f32 %v1816_v8, 0.0  ;;  %v3984_v8 = vld [vmem:[#allocation46_spill] sm:$0xff]  ;;  %v3985_v55 = vld [vmem:[#allocation55_spill] sm:$0xff] }
 0x23c   : > { %v1638_v10 = vmul.f32 %v2932_v31, %v3979_v15  ;;  %v1168_v11 = vadd.f32 %v1136_v54, %v1068_v22  ;;  %v1812_v53 = vadd.f32 %v3228_v47, %v1773_v37  ;;  %v1811_v3 = vadd.f32 %v3228_v47, %v1772_v14  ;;  %v3627_v36 = vld [vmem:[#allocation2 + $0xd9] sm:$0xff]  ;;  %v3986_v37 = vld [vmem:[#allocation43_spill] sm:$0xff]  ;;  %v3987_v54 = vld [vmem:[#allocation36_spill] sm:$0xff] }
 0x23d   : > { %v3601_v46 = vmin.f32 %v3978_v4, 6.0  ;;  %v935_v13 = vmul.f32 %v3969_v43, %v3592_v2  ;;  %v1035_v9 = vmul.f32 %v3970_v34, %v3594_v62  ;;  %v1810_v56 = vadd.f32 %v3228_v47, %v1771_v6  ;;  %v2452_v61 = vld [vmem:[#allocation2 + $0x60] sm:$0xff]  ;;  %v3989_v15 = vld [vmem:[#allocation52_spill] sm:$0xff] }
 0x23e   : > { %2296 = vmatpush3.xpose.msk.msra.mxu1 %vm788_vm2, %v3980_v41  ;;  %v1670_v49 = vadd.f32 %v1638_v10, %v1570_v33  ;;  %v1654_v44 = vadd.f32 %v3982_v30, %v3981_v52  ;;  %v1268_v48 = vadd.f32 %v1236_v7, %v1168_v11  ;;  %v1336_v16 = vmul.f32 %v2920_v17, %v3983_v39  ;;  %v3634_v33 = vld [vmem:[#allocation2 + $0xda] sm:$0xff]  ;;  %v3990_v41 = vld [vmem:[#allocation31_spill] sm:$0xff] }
 0x23f   : > { %2297 = vmatprep.subr.msk.mxu1 %vm788_vm2, %v1881_v60  ;;  %v1067_v38 = vadd.f32 %v1035_v9, %v935_v13  ;;  %v1135_v26 = vmul.f32 %v3974_v12, %v3605_v45  ;;  %v1235_v35 = vmul.f32 %v3976_v51, %v3984_v8  ;;  %v1880_v0 = vmin.f32 %v1848_v23, 6.0  ;;  %v3988_v60 = vld [vmem:[#allocation49_spill] sm:$0xff] }
 0x240   : > { %v1879_v19 = vmin.f32 %v1847_v1, 6.0  ;;  %v1738_v5 = vmul.f32 %v2934_v32, %v3985_v55  ;;  %v1521_v50 = vmul.f32 %v2452_v61, %v2924_v20  ;;  %v1844_v58 = vmax.f32 %v1812_v53, 0.0  ;;  %v897_v55 = vld [vmem:[#allocation2 + $0xc8] sm:$0xff] }
 0x241   : > { %v1843_v29 = vmax.f32 %v1811_v3, 0.0  ;;  %v1368_v14 = vadd.f32 %v1336_v16, %v1268_v48  ;;  %v1167_v6 = vadd.f32 %v1135_v26, %v1067_v38  ;;  %v1754_v7 = vadd.f32 %v3987_v54, %v1654_v44  ;;  %v3992_v44 = vld [vmem:[#allocation50_spill] sm:$0xff]  ;;  %v3994_v54 = vld [vmem:[#allocation40_spill] sm:$0xff] }
 0x242   : > { %2298 = vmatpush3.xpose.msk.msra.mxu1 %vm788_vm2, %v3986_v37  ;;  %v1770_v22 = vadd.f32 %v1738_v5, %v1670_v49  ;;  %v934_v1 = vmul.f32 %v3969_v43, %v3625_v24  ;;  %v1034_v59 = vmul.f32 %v3970_v34, %v3627_v36  ;;  %v1842_v4 = vmax.f32 %v1810_v56, 0.0  ;;  %v3991_v49 = vld [vmem:[#allocation45_spill] sm:$0xff]  ;;  %v2453_v26 = vld [vmem:[#allocation2 + $0x61] sm:$0xff] }
 0x243   : > { %2299 = vmatprep.subr.msk.mxu1 %vm788_vm2, %v1880_v0  ;;  %v1436_v23 = vmul.f32 %v2922_v18, %v3988_v60  ;;  %v1537_v10 = vmul.f32 %v2924_v20, %v3989_v15  ;;  %v1267_v11 = vadd.f32 %v1235_v35, %v1167_v6  ;;  %v1553_v53 = vadd.f32 %v1521_v50, %v3990_v41  ;;  %v3993_v37 = vld [vmem:[#allocation53_spill] sm:$0xff]  ;;  %v2454_v41 = vld [vmem:[#allocation2 + $0x62] sm:$0xff] }
 0x244   : > { %v1066_v3 = vadd.f32 %v1034_v59, %v934_v1  ;;  %v1134_v13 = vmul.f32 %v3974_v12, %v3634_v33  ;;  %v1234_v9 = vmul.f32 %v3976_v51, %v3553_v28  ;;  %v1878_v56 = vmin.f32 %v1846_v25, 6.0  ;;  %v3996_v59 = vld [vmem:[#allocation39_spill] sm:$0xff] }
 0x245   : > { %v1877_v52 = vmin.f32 %v1845_v63, 6.0  ;;  %v1468_v30 = vadd.f32 %v1436_v23, %v1368_v14  ;;  %v1335_v48 = vmul.f32 %v2920_v17, %v3992_v44  ;;  %v1809_v16 = vadd.f32 %v3228_v47, %v1770_v22  ;;  %v997_v22 = vld [vmem:[#allocation2 + $0xc9] sm:$0xff] }
 0x246   : > { %2300 = vmatpush3.xpose.msk.msra.mxu1 %vm788_vm2, %v3991_v49  ;;  %v1793_v38 = vadd.f32 %v3228_v47, %v1754_v7  ;;  %v1621_v35 = vmul.f32 %v2453_v26, %v2932_v31  ;;  %v1166_v0 = vadd.f32 %v1134_v13, %v1066_v3  ;;  %v1876_v5 = vmin.f32 %v1844_v58, 6.0  ;;  %v3995_v7 = vld [vmem:[#allocation54_spill] sm:$0xff]  ;;  %v1097_v3 = vld [vmem:[#allocation2 + $0xca] sm:$0xff] }
 0x247   : > { %2301 = vmatprep.subr.msk.mxu1 %vm788_vm2, %v1879_v19  ;;  %v3659_v61 = vmin.f32 %v1843_v29, 6.0  ;;  %v1569_v25 = vadd.f32 %v1537_v10, %v1468_v30  ;;  %v1367_v63 = vadd.f32 %v1335_v48, %v1267_v11  ;;  %v3661_v50 = vmin.f32 %v1842_v4, 6.0  ;;  %v3997_v10 = vld [vmem:[#allocation57_spill] sm:$0xff]  ;;  %v3998_v26 = vld [vmem:[#allocation32_spill] sm:$0xff] }
 0x248   : > { %v1637_v14 = vmul.f32 %v2932_v31, %v3993_v37  ;;  %v1653_v19 = vadd.f32 %v1621_v35, %v1553_v53  ;;  %v1266_v6 = vadd.f32 %v1234_v9, %v1166_v0  ;;  %v1435_v1 = vmul.f32 %v2922_v18, %v3995_v7  ;;  %v3999_v35 = vld [vmem:[#allocation28_spill] sm:$0xff] }
 0x249   : > { %v1536_v58 = vmul.f32 %v2924_v20, %v3996_v59  ;;  %v1334_v29 = vmul.f32 %v2920_v17, %v3560_v42  ;;  %v933_v4 = vmul.f32 %v3969_v43, %v897_v55  ;;  %v1841_v23 = vmax.f32 %v1809_v16, 0.0 }
 0x24a   : > { %2302 = vmatpush3.xpose.msk.msra.mxu1 %vm788_vm2, %v3994_v54  ;;  %v1825_v15 = vmax.f32 %v1793_v38, 0.0  ;;  %v1737_v11 = vmul.f32 %v2934_v32, %v3997_v10  ;;  %v1721_v53 = vmul.f32 %v2454_v41, %v2934_v32  ;;  %v1669_v13 = vadd.f32 %v1637_v14, %v1569_v25  ;;  %v4000_v38 = vld [vmem:[#allocation48_spill] sm:$0xff]  ;;  %v2456_v41 = vld [vmem:[#allocation2 + $0x20] sm:$0xff] }
 0x24b   : > { %2303 = vmatprep.subr.msk.mxu1 %vm788_vm2, %v1878_v56  ;;  %v1467_v9 = vadd.f32 %v1435_v1, %v1367_v63  ;;  %v1366_v49 = vadd.f32 %v1334_v29, %v1266_v6  ;;  %v1033_v30 = vmul.f32 %v3970_v34, %v997_v22  ;;  %v1652_v0 = vadd.f32 %v3999_v35, %v3998_v26  ;;  %v4001_v6 = vld [vmem:[#allocation30_spill] sm:$0xff]  ;;  %v4003_v29 = vld [vmem:[#allocation27_spill] sm:$0xff]  ;;  %v4006_v35 = vld [vmem:[#allocation29_spill] sm:$0xff] }
 0x24c   : > { %v1753_v48 = vadd.f32 %v1721_v53, %v1653_v19  ;;  %v1434_v56 = vmul.f32 %v2922_v18, %v3576_v27  ;;  %v1535_v16 = vmul.f32 %v2924_v20, %v3975_v57  ;;  %v1133_v25 = vmul.f32 %v3974_v12, %v1097_v3  ;;  %v896_v3 = vld [vmem:[#allocation2 + $0xc0] sm:$0xff] }
 0x24d   : > { %v1568_v55 = vadd.f32 %v1536_v58, %v1467_v9  ;;  %v1065_v37 = vadd.f32 %v1033_v30, %v933_v4  ;;  %v1233_v63 = vmul.f32 %v3976_v51, %v3592_v2  ;;  %v3691_v14 = vmin.f32 %v1841_v23, 6.0  ;;  %v4002_v58 = vld [vmem:[#allocation26_spill] sm:$0xff] }
 0x24e   : > { %2304 = vmatpush3.xpose.msk.msra.mxu1 %vm788_vm2, %v4000_v38  ;;  %v3693_v19 = vmin.f32 %v1825_v15, 6.0  ;;  %v1636_v22 = vmul.f32 %v2932_v31, %v4001_v6  ;;  %v1736_v57 = vmul.f32 %v2934_v32, %v3287_v21  ;;  %v1769_v54 = vadd.f32 %v1737_v11, %v1669_v13  ;;  %v2455_v15 = vld [vmem:[#allocation2 + $0x48] sm:$0xff] }
 0x24f   : > { %2305 = vmatprep.subr.msk.mxu1 %vm788_vm2, %v1877_v52  ;;  %v1466_v1 = vadd.f32 %v1434_v56, %v1366_v49  ;;  %v1165_v59 = vadd.f32 %v1133_v25, %v1065_v37  ;;  %v1149_v4 = vadd.f32 %v4003_v29, %v4002_v58  ;;  %v3702_v2 = vadd.f32 %v3228_v47, %v1753_v48  ;;  %v4004_v52 = vld [vmem:[#allocation33_spill] sm:$0xff]  ;;  %v4005_v21 = vld [vmem:[#allocation51_spill] sm:$0xff] }
 0x250   : > { %v3705_v23 = vadd.f32 %v4004_v52, %v1652_v0  ;;  %v1519_v10 = vmul.f32 %v2455_v15, %v2924_v20  ;;  %v1217_v53 = vmul.f32 %v2456_v41, %v3976_v51  ;;  %v1668_v11 = vadd.f32 %v1636_v22, %v1568_v55  ;;  %v996_v30 = vld [vmem:[#allocation2 + $0xc1] sm:$0xff]  ;;  %v4007_v0 = vld [vmem:[#allocation25_spill] sm:$0xff] }
 0x251   : > { %v1567_v13 = vadd.f32 %v1535_v16, %v1466_v1  ;;  %v1265_v9 = vadd.f32 %v1233_v63, %v1165_v59  ;;  %v1333_v49 = vmul.f32 %v2920_v17, %v3594_v62  ;;  %v1635_v48 = vmul.f32 %v2932_v31, %v3983_v39  ;;  %v2457_v37 = vld [vmem:[#allocation2 + $0x21] sm:$0xff]  ;;  %v2458_v1 = vld [vmem:[#allocation2 + $0x49] sm:$0xff] }
 0x252   : > { %2306 = vmatpush3.xpose.msk.msra.mxu1 %vm788_vm2, %v4005_v21  ;;  %v1735_v26 = vmul.f32 %v2934_v32, %v3988_v60  ;;  %v1450_v56 = vadd.f32 %v4007_v0, %v4006_v35  ;;  %v1249_v38 = vadd.f32 %v1217_v53, %v1149_v4  ;;  %v3721_v55 = vadd.f32 %v3228_v47, %v1769_v54  ;;  %v880_v29 = vld [vmem:[#allocation2] sm:$0xff]  ;;  %v2461_v21 = vld [vmem:[#allocation2 + $0x38] sm:$0xff] }
 0x253   : > { %2307 = vmatprep.subr.msk.mxu1 %vm788_vm2, %v1876_v5  ;;  %v1365_v16 = vadd.f32 %v1333_v49, %v1265_v9  ;;  %v1317_v62 = vmul.f32 %v2457_v37, %v2920_v17  ;;  %v932_v25 = vmul.f32 %v3969_v43, %v896_v3  ;;  %v1096_v5 = vld [vmem:[#allocation2 + $0xc2] sm:$0xff]  ;;  %v1433_v39 = vmul.f32 %v2922_v18, %v3605_v45 }
 0x254   : > { %v1551_v63 = vadd.f32 %v1519_v10, %v1450_v56  ;;  %v1534_v60 = vmul.f32 %v2924_v20, %v3984_v8  ;;  %v1032_v6 = vmul.f32 %v3970_v34, %v996_v30  ;;  %v1768_v22 = vadd.f32 %v1736_v57, %v1668_v11  ;;  %v980_v15 = vld [vmem:[#allocation2 + $0x1] sm:$0xff]  ;;  %v2459_v57 = vld [vmem:[#allocation2 + $0x4a] sm:$0xff] }
 0x255   : > { %v1667_v54 = vadd.f32 %v1635_v48, %v1567_v13  ;;  %v1619_v59 = vmul.f32 %v2458_v1, %v2932_v31  ;;  %v1349_v58 = vadd.f32 %v1317_v62, %v1249_v38  ;;  %v1465_v4 = vadd.f32 %v1433_v39, %v1365_v16  ;;  %v1080_v10 = vld [vmem:[#allocation2 + $0x2] sm:$0xff]  ;;  %v4008_v30 = vld [vmem:[#allocation56_spill] sm:$0xff]  ;;  %v2462_v62 = vld [vmem:[#allocation2 + $0x18] sm:$0xff] }
 0x256   : > { %2308 = vmatpush3.xpose.msk.msra.mxu1 %vm788_vm2, %v3585_v40  ;;  %v1064_v45 = vadd.f32 %v1032_v6, %v932_v25  ;;  %v1132_v52 = vmul.f32 %v3974_v12, %v1096_v5  ;;  %v1232_v8 = vmul.f32 %v3976_v51, %v3625_v24  ;;  %v1840_v40 = vmax.f32 %v3721_v55, 0.0  ;;  %v2460_v53 = vld [vmem:[#allocation2 + $0x22] sm:$0xff]  ;;  %v2463_v5 = vld [vmem:[#allocation2 + $0x39] sm:$0xff] }
 0x257   : > { %2309 = vmatprep.subr.msk.mxu1 %vm788_vm2, %v3659_v61  ;;  %v1719_v41 = vmul.f32 %v2459_v57, %v2934_v32  ;;  %v1417_v3 = vmul.f32 %v2460_v53, %v2922_v18  ;;  %v1518_v61 = vmul.f32 %v2461_v21, %v2924_v20  ;;  %v1651_v11 = vadd.f32 %v1619_v59, %v1551_v63  ;;  %v2465_v1 = vld [vmem:[%s3844_s4] ss:$0 sm:$0xff] }
 0x258   : > { %v1566_v13 = vadd.f32 %v1534_v60, %v1465_v4  ;;  %v1164_v9 = vadd.f32 %v1132_v52, %v1064_v45  ;;  %v916_v49 = vmul.f32 %v3969_v43, %v880_v29  ;;  %v1634_v24 = vmul.f32 %v2932_v31, %v3992_v44  ;;  %v2467_v52 = vld [vmem:[#allocation2 + $0x1a] sm:$0xff] }
 0x259   : > { %v1449_v48 = vadd.f32 %v1417_v3, %v1349_v58  ;;  %v1016_v35 = vmul.f32 %v3970_v34, %v980_v15  ;;  %v1116_v0 = vmul.f32 %v3974_v12, %v1080_v10  ;;  %v1807_v56 = vadd.f32 %v3228_v47, %v1768_v22  ;;  %v1885_v12 = vld [vmem:[%s3846_s6] sm:$0xf] }
 0x25a   : > { %2310 = vmatpush3.xpose.msk.msra.mxu1 %vm788_vm2, %v4008_v30  ;;  %v1767_v38 = vadd.f32 %v1735_v26, %v1667_v54  ;;  %v1264_v55 = vadd.f32 %v1232_v8, %v1164_v9  ;;  %v1332_v43 = vmul.f32 %v2920_v17, %v3627_v36  ;;  %v1432_v37 = vmul.f32 %v2922_v18, %v3634_v33  ;;  %v2468_v8 = vld [vmem:[#allocation2 + $0x30] sm:$0xff] }
 0x25b   : > { %2311 = vmatprep.subr.msk.mxu1 %vm788_vm2, %v3661_v50  ;;  %v1550_v16 = vadd.f32 %v1518_v61, %v1449_v48  ;;  %v1048_v44 = vadd.f32 %v1016_v35, %v916_v49  ;;  %v1216_v34 = vmul.f32 %v2462_v62, %v3976_v51  ;;  %v1666_v50 = vadd.f32 %v1634_v24, %v1566_v13  ;;  %v2469_v13 = vld [vmem:[#allocation2 + $0x31] sm:$0xff] }
 0x25c   : > { %v1364_v25 = vadd.f32 %v1332_v43, %v1264_v55  ;;  %v1533_v26 = vmul.f32 %v2924_v20, %v3553_v28  ;;  %v1824_v36 = vmax.f32 %v3702_v2, 0.0  ;;  %v1791_v33 = vadd.f32 %v3228_v47, %v3705_v23  ;;  %v2464_v47 = vld [vmem:[#allocation2 + $0x19] sm:$0xff] }
 0x25d   : > { %v1618_v51 = vmul.f32 %v2463_v5, %v2932_v31  ;;  %v1148_v63 = vadd.f32 %v1116_v0, %v1048_v44  ;;  %v2629_v39 = vmov 0   ;;  %v1872_v60 = vmin.f32 %v1840_v40, 6.0  ;;  %v2470_v24 = vld [vmem:[#allocation2 + $0x32] sm:$0xff] }
 0x25e   : > { %2312 = vmatpush3.xpose.msk.msra.mxu1 %vm788_vm2, %v3601_v46  ;;  %2448 = vset.pattern.permute.xlu1 %v2629_v39  ;;  %v1751_v6 = vadd.f32 %v1719_v41, %v1651_v11  ;;  %v1734_v28 = vmul.f32 %v2934_v32, %v3995_v7  ;;  %v1464_v46 = vadd.f32 %v1432_v37, %v1364_v25  ;;  %v1839_v2 = vmax.f32 %v1807_v56, 0.0  ;;  %v2466_v7 = vld [vmem:[#allocation2 + $0x3a] sm:$0xff] }
 0x25f   : > { %2313 = vmatprep.subr.msk.mxu1 %vm788_vm2, %v3691_v14  ;;  %1888 = vperm.xlu1 %2448, %v1885_v12   ;;  %v1650_v22 = vadd.f32 %v1618_v51, %v1550_v16  ;;  %v1248_v54 = vadd.f32 %v1216_v34, %v1148_v63  ;;  %v1316_v23 = vmul.f32 %v2464_v47, %v2920_v17  ;;  %v1823_v10 = vmax.f32 %v1791_v33, 0.0  ;;  %v2471_v12 = vld [vmem:[%s3845_s5] sm:$0xf]  ;;  %v2472_v5 = vld [vmem:[%s2795_s3] sm:$0xff]  ;;  %s2559_s3 = scalar_lea.vmem %s2558_s11, 256 }
 0x260   : > { %2449 = vset.pattern.permute.xlu0 %v2629_v39  ;;  %v1806_v59 = vadd.f32 %v2465_v1, %v1767_v38  ;;  %v1766_v14 = vadd.f32 %v1734_v28, %v1666_v50  ;;  %v1565_v58 = vadd.f32 %v1533_v26, %v1464_v46  ;;  %v1633_v29 = vmul.f32 %v2932_v31, %v3560_v42  ;;  %v4009_v63 = vld [vmem:[#allocation14_spill] sm:$0xff]  ;;  %p2561_p6 = scmp.lt.s32.totalorder %s2559_s3, %s2553_s13 }
 0x261   : > { %v1718_v4 = vmul.f32 %v2466_v7, %v2934_v32  ;;  %v1348_v45 = vadd.f32 %v1316_v23, %v1248_v54  ;;  %v1416_v17 = vmul.f32 %v2467_v52, %v2922_v18  ;;  %v1517_v15 = vmul.f32 %v2468_v8, %v2924_v20 }
 0x262   : > { %2314 = vmatpush3.xpose.msk.msra.mxu1 %vm788_vm2, %v3693_v19  ;;  %v1665_v40 = vadd.f32 %v1633_v29, %v1565_v58  ;;  %v1733_v42 = vmul.f32 %v2934_v32, %v3576_v27  ;;  %v1856_v57 = vmin.f32 %v1824_v36, 6.0  ;;  %v1790_v41 = vadd.f32 %v2465_v1, %v1751_v6  ;;  %p2562_p9 = por %p2561_p6, %p2560_p4 }
 0x263   : > { %2315 = vmatprep.subr.msk.mxu1 %vm788_vm2, %v1872_v60  ;;  %v1750_v19 = vadd.f32 %v1718_v4, %v1650_v22  ;;  %v1448_v53 = vadd.f32 %v1416_v17, %v1348_v45  ;;  %v1871_v3 = vmin.f32 %v1839_v2, 6.0  ;;  %v1838_v21 = vmax.f32 %v1806_v59, 0.0 }
 0x264   : > { %v1805_v61 = vadd.f32 %v2465_v1, %v1766_v14  ;;  %v1765_v11 = vadd.f32 %v1733_v42, %v1665_v40  ;;  %v1617_v20 = vmul.f32 %v2469_v13, %v2932_v31  ;;  %v1855_v9 = vmin.f32 %v1823_v10, 6.0  ;;  %p2563_p12 = pnand %p2562_p9, %p2556_p2 }
 0x265   : > { %v1549_v18 = vadd.f32 %v1517_v15, %v1448_v53  ;;  %v1822_v49 = vmax.f32 %v1790_v41, 0.0  ;;  %v1789_v30 = vadd.f32 %v2465_v1, %v1750_v19  ;;  %v1717_v48 = vmul.f32 %v2470_v24, %v2934_v32 }
 0x266   : > { %2316 = vmatpush3.xpose.msk.msra.mxu1 %vm788_vm2, %v1856_v57  ;;  %v1870_v35 = vmin.f32 %v1838_v21, 6.0  ;;  %v1837_v0 = vmax.f32 %v1805_v61, 0.0  ;;  %v1804_v56 = vadd.f32 %v2465_v1, %v1765_v11 }
 0x267   : > { %2317 = vmatprep.subr.msk.mxu1 %vm788_vm2, %v1871_v3  ;;  %v1649_v27 = vadd.f32 %v1617_v20, %v1549_v18  ;;  %v1854_v55 = vmin.f32 %v1822_v49, 6.0  ;;  %v1821_v43 = vmax.f32 %v1789_v30, 0.0 }
 0x268   : > { %v1869_v16 = vmin.f32 %v1837_v0, 6.0  ;;  %v1836_v37 = vmax.f32 %v1804_v56, 0.0 }
 0x269   : > { %v1749_v38 = vadd.f32 %v1717_v48, %v1649_v27  ;;  %v1853_v32 = vmin.f32 %v1821_v43, 6.0 }
 0x26a   : > { %2318 = vmatpush3.xpose.msk.msra.mxu1 %vm788_vm2, %v1855_v9  ;;  %v1868_v62 = vmin.f32 %v1836_v37, 6.0 }
 0x26b   : > { %2319 = vmatprep.subr.msk.mxu1 %vm788_vm2, %v1870_v35  ;;  %v1788_v31 = vadd.f32 %v2465_v1, %v1749_v38 }
 0x26d   : > { %v1820_v44 = vmax.f32 %v1788_v31, 0.0 }
 0x26e   : > { %2320 = vmatpush3.xpose.msk.msra.mxu1 %vm788_vm2, %v1854_v55 }
 0x26f   : > { %2321 = vmatprep.subr.msk.mxu1 %vm788_vm2, %v1869_v16  ;;  %v1852_v34 = vmin.f32 %v1820_v44, 6.0 }
 0x272   : > { %2322 = vmatpush3.xpose.msk.msra.mxu1 %vm788_vm2, %v1853_v32 }
 0x273   : > { %2323 = vmatprep.subr.msk.mxu1 %vm788_vm2, %v1868_v62 }
 0x276   : > { %2324 = vmatpush3.xpose.msk.msra.mxu1 %vm788_vm2, %v1852_v34 }
 0x279   : > { %2326 = vmatmul.mubr.msk.f32.vlgmr.msra.gmra.mxu1 %vm788_vm2, %v2471_v12 }
 0x2da   : > { %v1889_v50 = vpop.permute.xlu1 %1888 }
 0x339   : > { %v2056_v25 = vpop.f32.mrf.mxu1 }
 0x33a   : > { %v2057_v26 = vadd.f32 %v2056_v25, %v1889_v50 }
 0x33b   : > { %v2058_v36 = vpop.f32.mrf.mxu1 }
 0x33c   : > { %v2059_v33 = vadd.f32 %v2058_v36, %v1889_v50  ;;  %v2061_v51 = vadd.f32 %v2472_v5, %v2057_v26 }
 0x33e   : > { %v2062_v39 = vadd.f32 %v2059_v33, %v4009_v63 }
 0x340   : > { %v2065_v60 = vcombine.low %v2061_v51, %v2062_v39 }
 0x342   : > { %2067 = vst [vmem:[%s321_s9] sm:$0xff] %v2065_v60 }
 0x343   : > { %2566 = shalt.err (!%p2563_p12)
}
 0x344   : > { %s2567_s17 = scalar_lea.hbm %s2081_s22, 128  ;;  %s2571_s16 = scalar_lea.hbm %s3847_s7, 256 }
 0x345   : > { %p2568_p3 = scmp.ne.s32.totalorder %s2081_s22, %s2567_s17  ;;  %p2572_p8 = scmp.lt.s32.totalorder %s2081_s22, %s3847_s7 }
 0x346   : > { %p2573_p11 = scmp.lt.s32.totalorder %s2571_s16, %s2567_s17 }
 0x347   : > { %p2569_p7 = pnand %p2568_p3, %p4010_p0 }
 0x348   : > { %p2574_p5 = por %p2573_p11, %p2572_p8 }
 0x349   : > { %p2570_p10 = pneg %p2569_p7 }
 0x34b   : > { %p2575_p13 = pnand %p2574_p5, %p2570_p10 }
 0x34d   : > { %2578 = shalt.err (!%p2575_p13)
}
 0x34e   : > { %2387 = dma.vmem_to_hbm [thread:$0]  (%p4010_p0), %s2084_s19, 128, %s2081_s22, %s2069_s23  }
 0x34f PF: > { %s2095_s2 = sand.u32 1, %s2609_s24   ;;  %p4011_p1 = scmp.ne.s32.totalorder %s3892_s8, 0 }
 0x350   : > { %p4012_p2 = scmp.ge.s32.totalorder %s2621_s27, 2  ;;  %s2096_s9 = scalar_lea.sflag [#allocation6], %s2095_s2 }
 0x352   : > { %p2401_p4 = pnand %p4012_p2, %p4011_p1 }
 0x354   : > { %p2402_p6 = pneg %p2401_p4 }
 0x356   : > { %2604 = dma.done.wait (%p2402_p6), %s2096_s9, 128  }
 0x357   : > { %2606 = vsyncadd (%p2402_p6), %s2096_s9, 4294967168  ;;  %p21_p9 = scmp.ge.s32.totalorder %s2743_s29, 4   ;;  %s4013_s24 = smov %s2613_s25 }
 0x358   : > { %s4014_s25 = smov %s2617_s26  ;;  %s4015_s26 = smov %s2759_s15 }
 0x359   : > { %s4016_s27 = smov %s2743_s29  ;;  %23 = sbr.rel (!%p21_p9) target bundleno = 9 (0x9), region = 103 }
 0x35e   :  { %2101 = vsyncpa [#allocation5], 1 }
 0x35f   :  { %2103 = vsyncpa [#allocation5 + $0x1], 1 }
 0x360   :  { %2104 = vsyncpa [#allocation8], 1 }
 0x361   :  { %2105 = vsyncpa [#allocation6], 1 }
 0x362   :  { %2107 = vsyncpa [#allocation6 + $0x1], 1 }

</bundles_post_ra>
